<compile_context>
chip_gen: v6e
topology: v6e:2x2x1
jax: 0.10.0
libtpu: 0.0.40
codegen_flags: <defaults>
</compile_context>

<pallas_src>
import jax
import jax.numpy as jnp
from jax.experimental import pallas as pl
from jax.experimental.pallas import tpu as pltpu

LAYER_DIMS = [784, 512, 256, 256, 128, 64, 10]
K_PAD = 896       # 7 * 128: padded input-feature width (lane-aligned)
OUT_PAD = 128     # lane-dense output width; sliced to 10 in the wrapper
NEG_BIAS = -1e30  # bias for padded output columns -> exp() underflows to 0


def fc_net_kernel(x_ref,
                  w1_ref, b1_ref,
                  w2_ref, b2_ref,
                  w3_ref, b3_ref,
                  w4_ref, b4_ref,
                  w5_ref, b5_ref,
                  w6_ref, b6_ref,
                  o_ref):
    # Hidden layers: Linear -> ReLU. Dots take bf16 operands, accumulate in f32.
    h = x_ref[...]  # (TB, K_PAD) f32
    for w_ref, b_ref in ((w1_ref, b1_ref), (w2_ref, b2_ref), (w3_ref, b3_ref),
                         (w4_ref, b4_ref), (w5_ref, b5_ref)):
        z = jnp.dot(h.astype(jnp.bfloat16), w_ref[...],
                    preferred_element_type=jnp.float32) + b_ref[...]
        h = jnp.maximum(z, 0.0)  # ReLU in f32 (no bf16 VPU assumption)

    # Final Linear (lane-padded to OUT_PAD) + Softmax over the class axis.
    # Padded columns have zero weights and -1e30 bias -> exp == 0, so they do
    # not perturb the softmax of the 10 real classes.
    logits = jnp.dot(h.astype(jnp.bfloat16), w6_ref[...],
                     preferred_element_type=jnp.float32) + b6_ref[...]
    m = jnp.max(logits, axis=-1, keepdims=True)
    e = jnp.exp(logits - m)
    denom = jnp.sum(e, axis=-1, keepdims=True)
    o_ref[...] = (e * pl.reciprocal(denom, approx=False)).astype(o_ref.dtype)


def init_params(key):
    """Deterministic PyTorch-Linear-style init; weights stored as [in, out] (f32)."""
    params = []
    for i in range(len(LAYER_DIMS) - 1):
        fan_in, fan_out = LAYER_DIMS[i], LAYER_DIMS[i + 1]
        key, kw, kb = jax.random.split(key, 3)
        bound = 1.0 / jnp.sqrt(fan_in)
        w = jax.random.uniform(kw, (fan_in, fan_out), jnp.float32, -bound, bound)
        b = jax.random.uniform(kb, (1, fan_out), jnp.float32, -bound, bound)
        params.append((w, b))
    return params


def prepare_params(params):
    """Convert f32 [in,out] params to kernel format:
       bf16 weights, f32 biases, W1 padded along K, W6/b6 padded lane-dense."""
    flat = []
    n = len(params)
    for i, (w, b) in enumerate(params):
        w = w.astype(jnp.bfloat16)
        b = b.astype(jnp.float32)
        if i == 0:
            w = jnp.pad(w, ((0, K_PAD - w.shape[0]), (0, 0)))
        if i == n - 1:
            w = jnp.pad(w, ((0, 0), (0, OUT_PAD - w.shape[1])))
            b = jnp.pad(b, ((0, 0), (0, OUT_PAD - b.shape[1])),
                        constant_values=NEG_BIAS)
        flat.extend([w, b])
    return flat


def fc_net_forward(x, flat_params, *, block_b=256):
    """x: (B, 784) f32. Returns (B, 10) f32 softmax probabilities."""
    B, F = x.shape
    n_out = LAYER_DIMS[-1]

    # Batch tile: multiple of 8 (sublane), capped at block_b rows.
    tb = min(block_b, max(8, ((B + 7) // 8) * 8))
    b_pad = ((B + tb - 1) // tb) * tb

    # Pad batch rows and feature columns (zeros contribute nothing to the dot).
    x_p = jnp.pad(x.astype(jnp.float32), ((0, b_pad - B), (0, K_PAD - F)))

    # x / out are tiled over the batch grid; weights & biases use a constant
    # block index so they are DMA'd once and stay VMEM-resident.
    in_specs = [pl.BlockSpec((tb, K_PAD), lambda i: (i, 0))]
    for p in flat_params:
        in_specs.append(pl.BlockSpec(p.shape, lambda i: (0, 0)))
    out_spec = pl.BlockSpec((tb, OUT_PAD), lambda i: (i, 0))

    flops = 2 * b_pad * sum(LAYER_DIMS[i] * LAYER_DIMS[i + 1]
                            for i in range(len(LAYER_DIMS) - 1))
    bytes_accessed = (x_p.size * x_p.dtype.itemsize
                      + sum(int(p.size) * p.dtype.itemsize for p in flat_params)
                      + b_pad * OUT_PAD * 4)
    cost = pl.CostEstimate(flops=flops,
                           transcendentals=b_pad * OUT_PAD,
                           bytes_accessed=bytes_accessed)

    out = pl.pallas_call(
        fc_net_kernel,
        out_shape=jax.ShapeDtypeStruct((b_pad, OUT_PAD), jnp.float32),
        grid=(b_pad // tb,),
        in_specs=in_specs,
        out_specs=out_spec,
        compiler_params=pltpu.CompilerParams(
            dimension_semantics=("parallel",)),
        cost_estimate=cost,
    )(x_p, *flat_params)

    return out[:B, :n_out]


def fc_net_reference(x, params):
    """Pure-JAX reference in the same numerics as the kernel
       (bf16 dot operands, f32 accumulation, f32 bias/ReLU/softmax)."""
    h = x.astype(jnp.float32)
    n = len(params)
    for i, (w, b) in enumerate(params):
        z = jnp.dot(h.astype(jnp.bfloat16), w.astype(jnp.bfloat16),
                    preferred_element_type=jnp.float32) + b
        h = jnp.maximum(z, 0.0) if i < n - 1 else z
    return jax.nn.softmax(h, axis=1)


if __name__ == "__main__":
    key = jax.random.PRNGKey(0)
    key_x, key_p = jax.random.split(key)

    B = 8  # small batch for the self-test; the grid scales to serving batches
    x = jax.random.normal(key_x, (B, 784), dtype=jnp.float32)

    params = init_params(key_p)
    flat_params = prepare_params(params)

    out = fc_net_forward(x, flat_params)
    out = jax.block_until_ready(out)

    ref = fc_net_reference(x, params)
    assert out.shape == (B, 10)
    assert jnp.allclose(out, ref, atol=1e-4, rtol=1e-4), \
        float(jnp.max(jnp.abs(out - ref)))
    assert jnp.allclose(jnp.sum(out, axis=1), 1.0, atol=1e-4)

    print("KERNEL_OK")
</pallas_src>

<mosaic_0001>
module attributes {stable_mosaic.version = 11 : i64} {
  func.func @fc_net_kernel(%arg0: i32, %arg1: memref<8x896xf32, #tpu.memory_space<vmem>>, %arg2: memref<896x512xbf16, #tpu.memory_space<vmem>>, %arg3: memref<1x512xf32, #tpu.memory_space<vmem>>, %arg4: memref<512x256xbf16, #tpu.memory_space<vmem>>, %arg5: memref<1x256xf32, #tpu.memory_space<vmem>>, %arg6: memref<256x256xbf16, #tpu.memory_space<vmem>>, %arg7: memref<1x256xf32, #tpu.memory_space<vmem>>, %arg8: memref<256x128xbf16, #tpu.memory_space<vmem>>, %arg9: memref<1x128xf32, #tpu.memory_space<vmem>>, %arg10: memref<128x64xbf16, #tpu.memory_space<vmem>>, %arg11: memref<1x64xf32, #tpu.memory_space<vmem>>, %arg12: memref<64x128xbf16, #tpu.memory_space<vmem>>, %arg13: memref<1x128xf32, #tpu.memory_space<vmem>>, %arg14: memref<8x128xf32, #tpu.memory_space<vmem>>) attributes {dimension_semantics = [#tpu.dimension_semantics<parallel>], iteration_bounds = array<i64: 1>, scalar_prefetch = 0 : i64, scratch_operands = 0 : i64, tpu.core_type = #tpu.core_type<tc>, window_params = [{transform_indices = @transform_0, window_bounds = array<i64: 8, 896>}, {pipeline_mode = #tpu.pipeline_mode<synchronous>, transform_indices = @transform_1, window_bounds = array<i64: 896, 512>}, {pipeline_mode = #tpu.pipeline_mode<synchronous>, transform_indices = @transform_2, window_bounds = array<i64: 1, 512>}, {pipeline_mode = #tpu.pipeline_mode<synchronous>, transform_indices = @transform_3, window_bounds = array<i64: 512, 256>}, {pipeline_mode = #tpu.pipeline_mode<synchronous>, transform_indices = @transform_4, window_bounds = array<i64: 1, 256>}, {pipeline_mode = #tpu.pipeline_mode<synchronous>, transform_indices = @transform_5, window_bounds = array<i64: 256, 256>}, {pipeline_mode = #tpu.pipeline_mode<synchronous>, transform_indices = @transform_6, window_bounds = array<i64: 1, 256>}, {pipeline_mode = #tpu.pipeline_mode<synchronous>, transform_indices = @transform_7, window_bounds = array<i64: 256, 128>}, {pipeline_mode = #tpu.pipeline_mode<synchronous>, transform_indices = @transform_8, window_bounds = array<i64: 1, 128>}, {pipeline_mode = #tpu.pipeline_mode<synchronous>, transform_indices = @transform_9, window_bounds = array<i64: 128, 64>}, {pipeline_mode = #tpu.pipeline_mode<synchronous>, transform_indices = @transform_10, window_bounds = array<i64: 1, 64>}, {pipeline_mode = #tpu.pipeline_mode<synchronous>, transform_indices = @transform_11, window_bounds = array<i64: 64, 128>}, {pipeline_mode = #tpu.pipeline_mode<synchronous>, transform_indices = @transform_12, window_bounds = array<i64: 1, 128>}, {transform_indices = @transform_13, window_bounds = array<i64: 8, 128>}]} {
    %c0 = arith.constant 0 : index
    %c0_0 = arith.constant 0 : index
    %0 = vector.load %arg1[%c0, %c0_0] : memref<8x896xf32, #tpu.memory_space<vmem>>, vector<8x896xf32>
    %1 = arith.truncf %0 : vector<8x896xf32> to vector<8x896xbf16>
    %c0_1 = arith.constant 0 : index
    %c0_2 = arith.constant 0 : index
    %2 = vector.load %arg2[%c0_1, %c0_2] : memref<896x512xbf16, #tpu.memory_space<vmem>>, vector<896x512xbf16>
    %cst = arith.constant dense<0.000000e+00> : vector<8x512xf32>
    %3 = tpu.matmul %1, %2, %cst {dimension_numbers = #tpu.dot_dimension_numbers<[1], [0], [0], [1], [0, 0, 1, 1], [], []>} : vector<8x896xbf16>, vector<896x512xbf16>, vector<8x512xf32> -> vector<8x512xf32>
    %c0_3 = arith.constant 0 : index
    %c0_4 = arith.constant 0 : index
    %4 = vector.load %arg3[%c0_3, %c0_4] : memref<1x512xf32, #tpu.memory_space<vmem>>, vector<1x512xf32>
    %5 = vector.broadcast %4 : vector<1x512xf32> to vector<8x512xf32>
    %6 = arith.addf %3, %5 : vector<8x512xf32>
    %cst_5 = arith.constant 0.000000e+00 : f32
    %7 = vector.broadcast %cst_5 : f32 to vector<8x512xf32>
    %8 = arith.maximumf %6, %7 : vector<8x512xf32>
    %9 = arith.truncf %8 : vector<8x512xf32> to vector<8x512xbf16>
    %c0_6 = arith.constant 0 : index
    %c0_7 = arith.constant 0 : index
    %10 = vector.load %arg4[%c0_6, %c0_7] : memref<512x256xbf16, #tpu.memory_space<vmem>>, vector<512x256xbf16>
    %cst_8 = arith.constant dense<0.000000e+00> : vector<8x256xf32>
    %11 = tpu.matmul %9, %10, %cst_8 {dimension_numbers = #tpu.dot_dimension_numbers<[1], [0], [0], [1], [0, 0, 1, 1], [], []>} : vector<8x512xbf16>, vector<512x256xbf16>, vector<8x256xf32> -> vector<8x256xf32>
    %c0_9 = arith.constant 0 : index
    %c0_10 = arith.constant 0 : index
    %12 = vector.load %arg5[%c0_9, %c0_10] : memref<1x256xf32, #tpu.memory_space<vmem>>, vector<1x256xf32>
    %13 = vector.broadcast %12 : vector<1x256xf32> to vector<8x256xf32>
    %14 = arith.addf %11, %13 : vector<8x256xf32>
    %cst_11 = arith.constant 0.000000e+00 : f32
    %15 = vector.broadcast %cst_11 : f32 to vector<8x256xf32>
    %16 = arith.maximumf %14, %15 : vector<8x256xf32>
    %17 = arith.truncf %16 : vector<8x256xf32> to vector<8x256xbf16>
    %c0_12 = arith.constant 0 : index
    %c0_13 = arith.constant 0 : index
    %18 = vector.load %arg6[%c0_12, %c0_13] : memref<256x256xbf16, #tpu.memory_space<vmem>>, vector<256x256xbf16>
    %cst_14 = arith.constant dense<0.000000e+00> : vector<8x256xf32>
    %19 = tpu.matmul %17, %18, %cst_14 {dimension_numbers = #tpu.dot_dimension_numbers<[1], [0], [0], [1], [0, 0, 1, 1], [], []>} : vector<8x256xbf16>, vector<256x256xbf16>, vector<8x256xf32> -> vector<8x256xf32>
    %c0_15 = arith.constant 0 : index
    %c0_16 = arith.constant 0 : index
    %20 = vector.load %arg7[%c0_15, %c0_16] : memref<1x256xf32, #tpu.memory_space<vmem>>, vector<1x256xf32>
    %21 = vector.broadcast %20 : vector<1x256xf32> to vector<8x256xf32>
    %22 = arith.addf %19, %21 : vector<8x256xf32>
    %cst_17 = arith.constant 0.000000e+00 : f32
    %23 = vector.broadcast %cst_17 : f32 to vector<8x256xf32>
    %24 = arith.maximumf %22, %23 : vector<8x256xf32>
    %25 = arith.truncf %24 : vector<8x256xf32> to vector<8x256xbf16>
    %c0_18 = arith.constant 0 : index
    %c0_19 = arith.constant 0 : index
    %26 = vector.load %arg8[%c0_18, %c0_19] : memref<256x128xbf16, #tpu.memory_space<vmem>>, vector<256x128xbf16>
    %cst_20 = arith.constant dense<0.000000e+00> : vector<8x128xf32>
    %27 = tpu.matmul %25, %26, %cst_20 {dimension_numbers = #tpu.dot_dimension_numbers<[1], [0], [0], [1], [0, 0, 1, 1], [], []>} : vector<8x256xbf16>, vector<256x128xbf16>, vector<8x128xf32> -> vector<8x128xf32>
    %c0_21 = arith.constant 0 : index
    %c0_22 = arith.constant 0 : index
    %28 = vector.load %arg9[%c0_21, %c0_22] : memref<1x128xf32, #tpu.memory_space<vmem>>, vector<1x128xf32>
    %29 = vector.broadcast %28 : vector<1x128xf32> to vector<8x128xf32>
    %30 = arith.addf %27, %29 : vector<8x128xf32>
    %cst_23 = arith.constant 0.000000e+00 : f32
    %31 = vector.broadcast %cst_23 : f32 to vector<8x128xf32>
    %32 = arith.maximumf %30, %31 : vector<8x128xf32>
    %33 = arith.truncf %32 : vector<8x128xf32> to vector<8x128xbf16>
    %c0_24 = arith.constant 0 : index
    %c0_25 = arith.constant 0 : index
    %34 = vector.load %arg10[%c0_24, %c0_25] : memref<128x64xbf16, #tpu.memory_space<vmem>>, vector<128x64xbf16>
    %cst_26 = arith.constant dense<0.000000e+00> : vector<8x64xf32>
    %35 = tpu.matmul %33, %34, %cst_26 {dimension_numbers = #tpu.dot_dimension_numbers<[1], [0], [0], [1], [0, 0, 1, 1], [], []>} : vector<8x128xbf16>, vector<128x64xbf16>, vector<8x64xf32> -> vector<8x64xf32>
    %c0_27 = arith.constant 0 : index
    %c0_28 = arith.constant 0 : index
    %36 = vector.load %arg11[%c0_27, %c0_28] : memref<1x64xf32, #tpu.memory_space<vmem>>, vector<1x64xf32>
    %37 = vector.broadcast %36 : vector<1x64xf32> to vector<8x64xf32>
    %38 = arith.addf %35, %37 : vector<8x64xf32>
    %cst_29 = arith.constant 0.000000e+00 : f32
    %39 = vector.broadcast %cst_29 : f32 to vector<8x64xf32>
    %40 = arith.maximumf %38, %39 : vector<8x64xf32>
    %41 = arith.truncf %40 : vector<8x64xf32> to vector<8x64xbf16>
    %c0_30 = arith.constant 0 : index
    %c0_31 = arith.constant 0 : index
    %42 = vector.load %arg12[%c0_30, %c0_31] : memref<64x128xbf16, #tpu.memory_space<vmem>>, vector<64x128xbf16>
    %cst_32 = arith.constant dense<0.000000e+00> : vector<8x128xf32>
    %43 = tpu.matmul %41, %42, %cst_32 {dimension_numbers = #tpu.dot_dimension_numbers<[1], [0], [0], [1], [0, 0, 1, 1], [], []>} : vector<8x64xbf16>, vector<64x128xbf16>, vector<8x128xf32> -> vector<8x128xf32>
    %c0_33 = arith.constant 0 : index
    %c0_34 = arith.constant 0 : index
    %44 = vector.load %arg13[%c0_33, %c0_34] : memref<1x128xf32, #tpu.memory_space<vmem>>, vector<1x128xf32>
    %45 = vector.broadcast %44 : vector<1x128xf32> to vector<8x128xf32>
    %46 = arith.addf %43, %45 : vector<8x128xf32>
    %cst_35 = arith.constant dense<0xFF800000> : vector<8xf32>
    %47 = vector.multi_reduction <maximumf>, %46, %cst_35 [1] : vector<8x128xf32> to vector<8xf32>
    %48 = vector.shape_cast %47 : vector<8xf32> to vector<8x1xf32>
    %49 = vector.broadcast %48 : vector<8x1xf32> to vector<8x128xf32>
    %50 = arith.subf %46, %49 : vector<8x128xf32>
    %51 = math.exp %50 : vector<8x128xf32>
    %cst_36 = arith.constant dense<0.000000e+00> : vector<8xf32>
    %52 = vector.multi_reduction <add>, %51, %cst_36 [1] : vector<8x128xf32> to vector<8xf32>
    %53 = vector.shape_cast %52 : vector<8xf32> to vector<8x1xf32>
    %54 = tpu.reciprocal %53 : vector<8x1xf32> -> vector<8x1xf32>
    %55 = vector.broadcast %54 : vector<8x1xf32> to vector<8x128xf32>
    %56 = arith.mulf %51, %55 : vector<8x128xf32>
    %c0_37 = arith.constant 0 : index
    %c0_38 = arith.constant 0 : index
    %57 = vector.load %arg14[%c0_37, %c0_38] : memref<8x128xf32, #tpu.memory_space<vmem>>, vector<8x128xf32>
    tpu.vector_store %arg14[%c0_37, %c0_38], %56 {strides = array<i32>} : memref<8x128xf32, #tpu.memory_space<vmem>>, vector<8x128xf32>,
    return
  }
  func.func @transform_0(%arg0: i32) -> (i32, i32) {
    %c0_i32 = arith.constant 0 : i32
    %c0_i32_0 = arith.constant 0 : i32
    return %arg0, %c0_i32 : i32, i32
  }
  func.func @transform_1(%arg0: i32) -> (i32, i32) {
    %c0_i32 = arith.constant 0 : i32
    %c0_i32_0 = arith.constant 0 : i32
    %c0_i32_1 = arith.constant 0 : i32
    return %c0_i32, %c0_i32_0 : i32, i32
  }
  func.func @transform_2(%arg0: i32) -> (i32, i32) {
    %c0_i32 = arith.constant 0 : i32
    %c0_i32_0 = arith.constant 0 : i32
    %c0_i32_1 = arith.constant 0 : i32
    return %c0_i32, %c0_i32_0 : i32, i32
  }
  func.func @transform_3(%arg0: i32) -> (i32, i32) {
    %c0_i32 = arith.constant 0 : i32
    %c0_i32_0 = arith.constant 0 : i32
    %c0_i32_1 = arith.constant 0 : i32
    return %c0_i32, %c0_i32_0 : i32, i32
  }
  func.func @transform_4(%arg0: i32) -> (i32, i32) {
    %c0_i32 = arith.constant 0 : i32
    %c0_i32_0 = arith.constant 0 : i32
    %c0_i32_1 = arith.constant 0 : i32
    return %c0_i32, %c0_i32_0 : i32, i32
  }
  func.func @transform_5(%arg0: i32) -> (i32, i32) {
    %c0_i32 = arith.constant 0 : i32
    %c0_i32_0 = arith.constant 0 : i32
    %c0_i32_1 = arith.constant 0 : i32
    return %c0_i32, %c0_i32_0 : i32, i32
  }
  func.func @transform_6(%arg0: i32) -> (i32, i32) {
    %c0_i32 = arith.constant 0 : i32
    %c0_i32_0 = arith.constant 0 : i32
    %c0_i32_1 = arith.constant 0 : i32
    return %c0_i32, %c0_i32_0 : i32, i32
  }
  func.func @transform_7(%arg0: i32) -> (i32, i32) {
    %c0_i32 = arith.constant 0 : i32
    %c0_i32_0 = arith.constant 0 : i32
    %c0_i32_1 = arith.constant 0 : i32
    return %c0_i32, %c0_i32_0 : i32, i32
  }
  func.func @transform_8(%arg0: i32) -> (i32, i32) {
    %c0_i32 = arith.constant 0 : i32
    %c0_i32_0 = arith.constant 0 : i32
    %c0_i32_1 = arith.constant 0 : i32
    return %c0_i32, %c0_i32_0 : i32, i32
  }
  func.func @transform_9(%arg0: i32) -> (i32, i32) {
    %c0_i32 = arith.constant 0 : i32
    %c0_i32_0 = arith.constant 0 : i32
    %c0_i32_1 = arith.constant 0 : i32
    return %c0_i32, %c0_i32_0 : i32, i32
  }
  func.func @transform_10(%arg0: i32) -> (i32, i32) {
    %c0_i32 = arith.constant 0 : i32
    %c0_i32_0 = arith.constant 0 : i32
    %c0_i32_1 = arith.constant 0 : i32
    return %c0_i32, %c0_i32_0 : i32, i32
  }
  func.func @transform_11(%arg0: i32) -> (i32, i32) {
    %c0_i32 = arith.constant 0 : i32
    %c0_i32_0 = arith.constant 0 : i32
    %c0_i32_1 = arith.constant 0 : i32
    return %c0_i32, %c0_i32_0 : i32, i32
  }
  func.func @transform_12(%arg0: i32) -> (i32, i32) {
    %c0_i32 = arith.constant 0 : i32
    %c0_i32_0 = arith.constant 0 : i32
    %c0_i32_1 = arith.constant 0 : i32
    return %c0_i32, %c0_i32_0 : i32, i32
  }
  func.func @transform_13(%arg0: i32) -> (i32, i32) {
    %c0_i32 = arith.constant 0 : i32
    %c0_i32_0 = arith.constant 0 : i32
    return %arg0, %c0_i32 : i32, i32
  }
}

</mosaic_0001>

<bundles_post_ra>
// kernel: tpu_custom_call.1
= control target key start
LH: loop header
LB: loop body
LE: loop exit
PB: predicated region body
PF: predicated region fallthrough
CT: control target
= control target key end

     0   :  { %18 = vsyncpa [#allocation3], 0  ;;  %s4234_s0 = inlined_call_operand.vmem [shape: f32[8,896], index: 0, kind: input, shape index: {}]   ;;  %s4235_s1 = inlined_call_operand.hbm [shape: bf16[896,512], index: 1, kind: input, shape index: {}]   ;;  %s4236_s2 = inlined_call_operand.vmem [shape: f32[1,512], index: 2, kind: input, shape index: {}]   ;;  %s4237_s3 = inlined_call_operand.hbm [shape: bf16[512,256], index: 3, kind: input, shape index: {}]   ;;  %s4238_s4 = inlined_call_operand.vmem [shape: f32[1,256], index: 4, kind: input, shape index: {}]   ;;  %s4239_s5 = inlined_call_operand.hbm [shape: bf16[256,256], index: 5, kind: input, shape index: {}]   ;;  %s4240_s6 = inlined_call_operand.vmem [shape: f32[1,256], index: 6, kind: input, shape index: {}]   ;;  %s4241_s7 = inlined_call_operand.hbm [shape: bf16[256,128], index: 7, kind: input, shape index: {}]   ;;  %s4242_s8 = inlined_call_operand.vmem [shape: f32[1,128], index: 8, kind: input, shape index: {}]   ;;  %s4243_s9 = inlined_call_operand.vmem [shape: bf16[128,64], index: 9, kind: input, shape index: {}]   ;;  %s4244_s10 = inlined_call_operand.vmem [shape: f32[1,64], index: 10, kind: input, shape index: {}]   ;;  %s4245_s11 = inlined_call_operand.vmem [shape: bf16[64,128], index: 11, kind: input, shape index: {}]   ;;  %s4246_s12 = inlined_call_operand.vmem [shape: f32[1,128], index: 12, kind: input, shape index: {}]   ;;  %s4247_s13 = inlined_call_operand.hbm [shape: f32[8,128], index: 13, kind: output, shape index: {}]  }
   0x1   :  { %19 = vsyncpa [#allocation6], 0 }
   0x2   :  { %20 = vsyncpa [#allocation9], 0 }
   0x3   :  { %21 = vsyncpa [#allocation4], 0  ;;  %s4002_s25 = smov [#allocation5]  }
   0x4   :  { %s43_s26 = sshll.u32 %s4002_s25, 4  ;;  %s44_s26 = int_to_ptr.vmem [resolvable:$true] %s43_s26 }
   0x5   :  { %s3902_s27 = scalar_lea.vmem %s44_s26, 8192  ;;  %p3907_p1 = scmp.lt.s32.totalorder %s44_s26, %s44_s26 }
   0x6   :  { %p3903_p0 = scmp.ne.s32.totalorder %s44_s26, %s3902_s27  ;;  %p3908_p2 = scmp.lt.s32.totalorder %s3902_s27, %s3902_s27 }
   0x8   :  { %p3909_p3 = por %p3908_p2, %p3907_p1 }
   0xa   :  { %p3910_p4 = pnand %p3909_p3, %p3903_p0 }
   0xc   :  { %3913 = shalt.err (!%p3910_p4)
}
   0xd   :  { %s4003_s28 = smov 128   ;;  %s4004_s29 = smov 8  }
   0xe   :  { %49 = dma.hbm_to_vmem [thread:$0]  %s4237_s3, 8192, %s44_s26, [#allocation6], %s4003_s28, %s4003_s28, %s4004_s29  }
   0xf   :  { %s4005_s15 = smov [#allocation2]  }
  0x10   :  { %s29_s16 = sshll.u32 %s4005_s15, 4  ;;  %s30_s16 = int_to_ptr.vmem [resolvable:$true] %s29_s16 }
  0x11   :  { %s3922_s17 = scalar_lea.vmem %s30_s16, 28672  ;;  %p3927_p6 = scmp.lt.s32.totalorder %s30_s16, %s30_s16 }
  0x12   :  { %p3923_p5 = scmp.ne.s32.totalorder %s30_s16, %s3922_s17  ;;  %p3928_p7 = scmp.lt.s32.totalorder %s3922_s17, %s3922_s17 }
  0x14   :  { %p3929_p8 = por %p3928_p7, %p3927_p6 }
  0x16   :  { %p3930_p9 = pnand %p3929_p8, %p3923_p5 }
  0x18   :  { %3933 = shalt.err (!%p3930_p9)
}
  0x19   :  { %s4006_s18 = smov 256   ;;  %s4007_s19 = smov 16  }
  0x1a   :  { %35 = dma.hbm_to_vmem [thread:$0]  %s4235_s1, 28672, %s30_s16, [#allocation3], %s4006_s18, %s4006_s18, %s4007_s19  }
  0x1b   :  { %s4008_s22 = smov [#allocation7]   ;;  %s4009_s24 = smov [#allocation8]  }
  0x1c   :  { %s57_s23 = sshll.u32 %s4008_s22, 4  ;;  %s71_s3 = sshll.u32 %s4009_s24, 4  ;;  %s58_s23 = int_to_ptr.vmem [resolvable:$true] %s57_s23  ;;  %s72_s3 = int_to_ptr.vmem [resolvable:$true] %s71_s3 }
  0x1d   :  { %s3942_s25 = scalar_lea.vmem %s58_s23, 4096  ;;  %p3947_p11 = scmp.lt.s32.totalorder %s58_s23, %s58_s23 }
  0x1e   :  { %p3943_p10 = scmp.ne.s32.totalorder %s58_s23, %s3942_s25  ;;  %p3948_p12 = scmp.lt.s32.totalorder %s3942_s25, %s3942_s25 }
  0x20   :  { %p3949_p13 = por %p3948_p12, %p3947_p11 }
  0x22   :  { %p3950_p0 = pnand %p3949_p13, %p3943_p10 }
  0x24   :  { %3953 = shalt.err (!%p3950_p0)
}
  0x25   :  { %63 = dma.hbm_to_vmem [thread:$0]  %s4239_s5, 4096, %s58_s23, [#allocation6], %s4003_s28, %s4003_s28, %s4004_s29  }
  0x26   :  { %s3962_s1 = scalar_lea.vmem %s72_s3, 2048  ;;  %p3967_p2 = scmp.lt.s32.totalorder %s72_s3, %s72_s3 }
  0x27   :  { %p3963_p1 = scmp.ne.s32.totalorder %s72_s3, %s3962_s1  ;;  %p3968_p3 = scmp.lt.s32.totalorder %s3962_s1, %s3962_s1 }
  0x29   :  { %p3969_p4 = por %p3968_p3, %p3967_p2 }
  0x2b   :  { %p3970_p5 = pnand %p3969_p4, %p3963_p1 }
  0x2d   :  { %3973 = shalt.err (!%p3970_p5)
}
  0x2e   :  { %s4010_s30 = smov 64   ;;  %s4011_s14 = smov 4  }
  0x2f   :  { %77 = dma.hbm_to_vmem [thread:$0]  %s4241_s7, 2048, %s72_s3, [#allocation9], %s4010_s30, %s4010_s30, %s4011_s14  }
  0x30   :  { %3994 = dma.done.wait [#allocation3], 28672  }
  0x31   :  { %3995 = vsyncadd [#allocation3], 4294938624 }
  0x32   :  { %3996 = dma.done.wait [#allocation6], 12288  }
  0x33   :  { %3997 = vsyncadd [#allocation6], 4294955008 }
  0x34   :  { %3998 = dma.done.wait [#allocation9], 2048  }
  0x35   :  { %3999 = vsyncadd [#allocation9], 4294965248  ;;  %v3382_v0 = vld [vmem:[#allocation2 + $0xe4] ss:$16 sps:$4 sm:$0xff]   ;;  %v3386_v2 = vld [vmem:[#allocation2 + $0xe0] ss:$16 sps:$4 sm:$0xff]  }
  0x36   :  { %v3384_v1 = vld [vmem:[#allocation2 + $0x2e4] ss:$16 sps:$4 sm:$0xff]   ;;  %1481 = vmatprep.subr.bf16.mxu0 %v3382_v0  ;;  %v3387_v3 = vld [vmem:[#allocation2 + $0x2e0] ss:$16 sps:$4 sm:$0xff]   ;;  %v102_v46 = vld [vmem:[%s4234_s0 + $0x8] sm:$0xff]  ;;  %vm4014_vm0 = vmmov 0  }
  0x37   :  { %1522 = vmatprep.subr.bf16.mxu1 %v3384_v1  ;;  %v3388_v4 = vld [vmem:[#allocation2 + $0xc4] ss:$16 sps:$4 sm:$0xff]   ;;  %1482 = vmatpush1.bf16.msra.mxu0 %v3386_v2  ;;  %v3392_v6 = vld [vmem:[#allocation2 + $0xc0] ss:$16 sps:$4 sm:$0xff]   ;;  %v4107_v49 = vpack.c.bf16 %v102_v46, %v102_v46  ;;  %v104_v50 = vld [vmem:[%s4234_s0 + $0x18] sm:$0xff]  ;;  %vm2877_vm1 = vcmask 523264  }
  0x38   :  { %1523 = vmatpush1.bf16.msra.mxu1 %v3387_v3  ;;  %v3390_v5 = vld [vmem:[#allocation2 + $0x2c4] ss:$16 sps:$4 sm:$0xff]   ;;  %1483 = vmatprep.subr.bf16.mxu0 %v3388_v4  ;;  %v3393_v7 = vld [vmem:[#allocation2 + $0x2c0] ss:$16 sps:$4 sm:$0xff]   ;;  %v4112_v52 = vpack.c.bf16 %v104_v50, %v104_v50 }
  0x39   :  { %1524 = vmatprep.subr.bf16.mxu1 %v3390_v5  ;;  %v3394_v8 = vld [vmem:[#allocation2 + $0xa4] ss:$16 sps:$4 sm:$0xff]   ;;  %v3398_v10 = vld [vmem:[#allocation2 + $0xa0] ss:$16 sps:$4 sm:$0xff]   ;;  %1513 = vmatprep.mubr.bf16.mxu0 %v4107_v49 }
  0x3a   :  { %v3396_v9 = vld [vmem:[#allocation2 + $0x2a4] ss:$16 sps:$4 sm:$0xff]   ;;  %v3399_v11 = vld [vmem:[#allocation2 + $0x2a0] ss:$16 sps:$4 sm:$0xff]   ;;  %1554 = vmatprep.mubr.bf16.mxu1 %v4112_v52 }
  0x3b   :  { %1484 = vmatpush1.bf16.msra.mxu0 %v3392_v6  ;;  %v3400_v12 = vld [vmem:[#allocation2 + $0x84] ss:$16 sps:$4 sm:$0xff]   ;;  %v3404_v14 = vld [vmem:[#allocation2 + $0x80] ss:$16 sps:$4 sm:$0xff]  }
  0x3c   :  { %1525 = vmatpush1.bf16.msra.mxu1 %v3393_v7  ;;  %1485 = vmatprep.subr.bf16.mxu0 %v3394_v8  ;;  %v3402_v13 = vld [vmem:[#allocation2 + $0x284] ss:$16 sps:$4 sm:$0xff]   ;;  %v3405_v15 = vld [vmem:[#allocation2 + $0x280] ss:$16 sps:$4 sm:$0xff]  }
  0x3d   :  { %1526 = vmatprep.subr.bf16.mxu1 %v3396_v9  ;;  %v3406_v16 = vld [vmem:[#allocation2 + $0x64] ss:$16 sps:$4 sm:$0xff]   ;;  %v3410_v18 = vld [vmem:[#allocation2 + $0x60] ss:$16 sps:$4 sm:$0xff]  }
  0x3e   :  { %v3408_v17 = vld [vmem:[#allocation2 + $0x264] ss:$16 sps:$4 sm:$0xff]   ;;  %v3411_v19 = vld [vmem:[#allocation2 + $0x260] ss:$16 sps:$4 sm:$0xff]  }
  0x3f   :  { %1486 = vmatpush1.bf16.msra.mxu0 %v3398_v10  ;;  %v3412_v20 = vld [vmem:[#allocation2 + $0x44] ss:$16 sps:$4 sm:$0xff]   ;;  %v3416_v22 = vld [vmem:[#allocation2 + $0x40] ss:$16 sps:$4 sm:$0xff]  }
  0x40   :  { %1527 = vmatpush1.bf16.msra.mxu1 %v3399_v11  ;;  %1487 = vmatprep.subr.bf16.mxu0 %v3400_v12  ;;  %v3414_v21 = vld [vmem:[#allocation2 + $0x244] ss:$16 sps:$4 sm:$0xff]   ;;  %v3417_v23 = vld [vmem:[#allocation2 + $0x240] ss:$16 sps:$4 sm:$0xff]  }
  0x41   :  { %1528 = vmatprep.subr.bf16.mxu1 %v3402_v13  ;;  %v3418_v24 = vld [vmem:[#allocation2 + $0x24] ss:$16 sps:$4 sm:$0xff]   ;;  %v3422_v26 = vld [vmem:[#allocation2 + $0x20] ss:$16 sps:$4 sm:$0xff]  }
  0x42   :  { %v3420_v25 = vld [vmem:[#allocation2 + $0x224] ss:$16 sps:$4 sm:$0xff]   ;;  %v3423_v27 = vld [vmem:[#allocation2 + $0x220] ss:$16 sps:$4 sm:$0xff]  }
  0x43   :  { %1488 = vmatpush1.bf16.msra.mxu0 %v3404_v14  ;;  %v3424_v28 = vld [vmem:[#allocation2 + $0x4] ss:$16 sps:$4 sm:$0xff]   ;;  %v3428_v30 = vld [vmem:[#allocation2] ss:$16 sps:$4 sm:$0xff]  }
  0x44   :  { %1529 = vmatpush1.bf16.msra.mxu1 %v3405_v15  ;;  %1489 = vmatprep.subr.bf16.mxu0 %v3406_v16  ;;  %v3426_v29 = vld [vmem:[#allocation2 + $0x204] ss:$16 sps:$4 sm:$0xff]   ;;  %v3429_v31 = vld [vmem:[#allocation2 + $0x200] ss:$16 sps:$4 sm:$0xff]  }
  0x45   :  { %1530 = vmatprep.subr.bf16.mxu1 %v3408_v17  ;;  %v3430_v32 = vld [vmem:[#allocation2 + $0x1e4] ss:$16 sps:$4 sm:$0xff]   ;;  %v3434_v34 = vld [vmem:[#allocation2 + $0x1e0] ss:$16 sps:$4 sm:$0xff]  }
  0x46   :  { %v3432_v33 = vld [vmem:[#allocation2 + $0x3e4] ss:$16 sps:$4 sm:$0xff]   ;;  %v3435_v35 = vld [vmem:[#allocation2 + $0x3e0] ss:$16 sps:$4 sm:$0xff]  }
  0x47   :  { %1490 = vmatpush1.bf16.msra.mxu0 %v3410_v18  ;;  %v3436_v36 = vld [vmem:[#allocation2 + $0x1c4] ss:$16 sps:$4 sm:$0xff]   ;;  %v3440_v38 = vld [vmem:[#allocation2 + $0x1c0] ss:$16 sps:$4 sm:$0xff]   ;;  %v4012_v18 = vmov 0  }
  0x48   :  { %1531 = vmatpush1.bf16.msra.mxu1 %v3411_v19  ;;  %1491 = vmatprep.subr.bf16.mxu0 %v3412_v20  ;;  %v3438_v37 = vld [vmem:[#allocation2 + $0x3c4] ss:$16 sps:$4 sm:$0xff]   ;;  %v3441_v39 = vld [vmem:[#allocation2 + $0x3c0] ss:$16 sps:$4 sm:$0xff]  }
  0x49   :  { %1532 = vmatprep.subr.bf16.mxu1 %v3414_v21  ;;  %v3442_v40 = vld [vmem:[#allocation2 + $0x1a4] ss:$16 sps:$4 sm:$0xff]   ;;  %v3446_v42 = vld [vmem:[#allocation2 + $0x1a0] ss:$16 sps:$4 sm:$0xff]  }
  0x4a   :  { %v3444_v41 = vld [vmem:[#allocation2 + $0x3a4] ss:$16 sps:$4 sm:$0xff]   ;;  %v3447_v43 = vld [vmem:[#allocation2 + $0x3a0] ss:$16 sps:$4 sm:$0xff]  }
  0x4b   :  { %1492 = vmatpush1.bf16.msra.mxu0 %v3416_v22  ;;  %v3448_v44 = vld [vmem:[#allocation2 + $0x184] ss:$16 sps:$4 sm:$0xff]   ;;  %v3452_v47 = vld [vmem:[#allocation2 + $0x180] ss:$16 sps:$4 sm:$0xff]  }
  0x4c   :  { %1533 = vmatpush1.bf16.msra.mxu1 %v3417_v23  ;;  %1493 = vmatprep.subr.bf16.mxu0 %v3418_v24  ;;  %v3450_v45 = vld [vmem:[#allocation2 + $0x384] ss:$16 sps:$4 sm:$0xff]   ;;  %v3453_v48 = vld [vmem:[#allocation2 + $0x380] ss:$16 sps:$4 sm:$0xff]  }
  0x4d   :  { %1534 = vmatprep.subr.bf16.mxu1 %v3420_v25  ;;  %v3454_v51 = vld [vmem:[#allocation2 + $0x164] ss:$16 sps:$4 sm:$0xff]   ;;  %v3458_v54 = vld [vmem:[#allocation2 + $0x160] ss:$16 sps:$4 sm:$0xff]  }
  0x4e   :  { %v3456_v53 = vld [vmem:[#allocation2 + $0x364] ss:$16 sps:$4 sm:$0xff]   ;;  %v3459_v55 = vld [vmem:[#allocation2 + $0x360] ss:$16 sps:$4 sm:$0xff]  }
  0x4f   :  { %1494 = vmatpush1.bf16.msra.mxu0 %v3422_v26  ;;  %v3460_v56 = vld [vmem:[#allocation2 + $0x144] ss:$16 sps:$4 sm:$0xff]   ;;  %v3464_v58 = vld [vmem:[#allocation2 + $0x140] ss:$16 sps:$4 sm:$0xff]  }
  0x50   :  { %1535 = vmatpush1.bf16.msra.mxu1 %v3423_v27  ;;  %1495 = vmatprep.subr.bf16.mxu0 %v3424_v28  ;;  %v3462_v57 = vld [vmem:[#allocation2 + $0x344] ss:$16 sps:$4 sm:$0xff]   ;;  %v3465_v59 = vld [vmem:[#allocation2 + $0x340] ss:$16 sps:$4 sm:$0xff]  }
  0x51   :  { %1536 = vmatprep.subr.bf16.mxu1 %v3426_v29  ;;  %v3466_v60 = vld [vmem:[#allocation2 + $0x124] ss:$16 sps:$4 sm:$0xff]   ;;  %v3470_v62 = vld [vmem:[#allocation2 + $0x120] ss:$16 sps:$4 sm:$0xff]  }
  0x52   :  { %v3468_v61 = vld [vmem:[#allocation2 + $0x324] ss:$16 sps:$4 sm:$0xff]   ;;  %v3471_v63 = vld [vmem:[#allocation2 + $0x320] ss:$16 sps:$4 sm:$0xff]  }
  0x53   :  { %1496 = vmatpush1.bf16.msra.mxu0 %v3428_v30  ;;  %v3472_v0 = vld [vmem:[#allocation2 + $0x104] ss:$16 sps:$4 sm:$0xff]   ;;  %v3476_v2 = vld [vmem:[#allocation2 + $0x100] ss:$16 sps:$4 sm:$0xff]  }
  0x54   :  { %1537 = vmatpush1.bf16.msra.mxu1 %v3429_v31  ;;  %1497 = vmatprep.subr.bf16.mxu0 %v3430_v32  ;;  %v3474_v1 = vld [vmem:[#allocation2 + $0x304] ss:$16 sps:$4 sm:$0xff]   ;;  %v3477_v3 = vld [vmem:[#allocation2 + $0x300] ss:$16 sps:$4 sm:$0xff]  }
  0x55   :  { %1538 = vmatprep.subr.bf16.mxu1 %v3432_v33  ;;  %v101_v4 = vld [vmem:[%s4234_s0] sm:$0xff]  ;;  %v103_v5 = vld [vmem:[%s4234_s0 + $0x10] sm:$0xff] }
  0x56   :  { %v3480_v6 = vld [vmem:[#allocation2 + $0x4e4] ss:$16 sps:$4 sm:$0xff]   ;;  %v4122_v8 = vpack.c.bf16 %v101_v4, %v101_v4  ;;  %v4124_v9 = vpack.c.bf16 %v103_v5, %v103_v5  ;;  %v3478_v10 = vld [vmem:[#allocation2 + $0x4e0] ss:$16 sps:$4 sm:$0xff]   ;;  %v3559_v5 = vld [vmem:[#allocation2 + $0x48] ss:$16 sps:$4 sm:$0xff]  }
  0x57   :  { %1498 = vmatpush2.bf16.msra.mxu0 %v3434_v34  ;;  %v3483_v7 = vld [vmem:[#allocation2 + $0x6e4] ss:$16 sps:$4 sm:$0xff]   ;;  %v3481_v11 = vld [vmem:[#allocation2 + $0x6e0] ss:$16 sps:$4 sm:$0xff]  }
  0x58   :  { %1539 = vmatpush2.bf16.msra.mxu1 %v3435_v35  ;;  %1499 = vmatprep.subr.bf16.mxu0 %v3436_v36  ;;  %v3486_v12 = vld [vmem:[#allocation2 + $0x4c4] ss:$16 sps:$4 sm:$0xff]   ;;  %v3484_v14 = vld [vmem:[#allocation2 + $0x4c0] ss:$16 sps:$4 sm:$0xff]   ;;  %v106_v36 = vld [vmem:[%s4234_s0 + $0x28] sm:$0xff] }
  0x59   :  { %1540 = vmatprep.subr.bf16.mxu1 %v3438_v37  ;;  %v3489_v13 = vld [vmem:[#allocation2 + $0x6c4] ss:$16 sps:$4 sm:$0xff]   ;;  %v3487_v15 = vld [vmem:[#allocation2 + $0x6c0] ss:$16 sps:$4 sm:$0xff]  }
  0x5a   :  { %v3492_v16 = vld [vmem:[#allocation2 + $0x4a4] ss:$16 sps:$4 sm:$0xff]   ;;  %v3490_v19 = vld [vmem:[#allocation2 + $0x4a0] ss:$16 sps:$4 sm:$0xff]  }
  0x5b   :  { %1500 = vmatpush2.bf16.msra.mxu0 %v3440_v38  ;;  %v3495_v17 = vld [vmem:[#allocation2 + $0x6a4] ss:$16 sps:$4 sm:$0xff]   ;;  %v3493_v20 = vld [vmem:[#allocation2 + $0x6a0] ss:$16 sps:$4 sm:$0xff]  }
  0x5c   :  { %1541 = vmatpush2.bf16.msra.mxu1 %v3441_v39  ;;  %1501 = vmatprep.subr.bf16.mxu0 %v3442_v40  ;;  %v3498_v21 = vld [vmem:[#allocation2 + $0x484] ss:$16 sps:$4 sm:$0xff]   ;;  %v3496_v23 = vld [vmem:[#allocation2 + $0x480] ss:$16 sps:$4 sm:$0xff]   ;;  %v4132_v39 = vpack.c.bf16 %v106_v36, %v106_v36  ;;  %v3603_v36 = vld [vmem:[#allocation2 + $0x26c] ss:$16 sps:$4 sm:$0xff]  }
  0x5d   :  { %1542 = vmatprep.subr.bf16.mxu1 %v3444_v41  ;;  %v3501_v22 = vld [vmem:[#allocation2 + $0x684] ss:$16 sps:$4 sm:$0xff]   ;;  %v3499_v24 = vld [vmem:[#allocation2 + $0x680] ss:$16 sps:$4 sm:$0xff]  }
  0x5e   :  { %v3504_v25 = vld [vmem:[#allocation2 + $0x464] ss:$16 sps:$4 sm:$0xff]   ;;  %v3502_v27 = vld [vmem:[#allocation2 + $0x460] ss:$16 sps:$4 sm:$0xff]  }
  0x5f   :  { %1502 = vmatpush2.bf16.msra.mxu0 %v3446_v42  ;;  %v3507_v26 = vld [vmem:[#allocation2 + $0x664] ss:$16 sps:$4 sm:$0xff]   ;;  %v3505_v28 = vld [vmem:[#allocation2 + $0x660] ss:$16 sps:$4 sm:$0xff]  }
  0x60   :  { %1543 = vmatpush2.bf16.msra.mxu1 %v3447_v43  ;;  %1503 = vmatprep.subr.bf16.mxu0 %v3448_v44  ;;  %v3510_v29 = vld [vmem:[#allocation2 + $0x444] ss:$16 sps:$4 sm:$0xff]   ;;  %v3508_v31 = vld [vmem:[#allocation2 + $0x440] ss:$16 sps:$4 sm:$0xff]  }
  0x61   :  { %1544 = vmatprep.subr.bf16.mxu1 %v3450_v45  ;;  %v3513_v30 = vld [vmem:[#allocation2 + $0x644] ss:$16 sps:$4 sm:$0xff]   ;;  %v3511_v32 = vld [vmem:[#allocation2 + $0x640] ss:$16 sps:$4 sm:$0xff]   ;;  %v3531_v45 = vld [vmem:[#allocation2 + $0xec] ss:$16 sps:$4 sm:$0xff]  }
  0x62   :  { %v3516_v33 = vld [vmem:[#allocation2 + $0x424] ss:$16 sps:$4 sm:$0xff]   ;;  %v3514_v35 = vld [vmem:[#allocation2 + $0x420] ss:$16 sps:$4 sm:$0xff]  }
  0x63   :  { %1504 = vmatpush2.bf16.msra.mxu0 %v3452_v47  ;;  %v3519_v34 = vld [vmem:[#allocation2 + $0x624] ss:$16 sps:$4 sm:$0xff]   ;;  %v3517_v37 = vld [vmem:[#allocation2 + $0x620] ss:$16 sps:$4 sm:$0xff]  }
  0x64   :  { %1545 = vmatpush2.bf16.msra.mxu1 %v3453_v48  ;;  %1505 = vmatprep.subr.bf16.mxu0 %v3454_v51  ;;  %v3522_v38 = vld [vmem:[#allocation2 + $0x404] ss:$16 sps:$4 sm:$0xff]   ;;  %v3520_v41 = vld [vmem:[#allocation2 + $0x400] ss:$16 sps:$4 sm:$0xff]   ;;  %v3529_v48 = vld [vmem:[#allocation2 + $0xe8] ss:$16 sps:$4 sm:$0xff]  }
  0x65   :  { %1546 = vmatprep.subr.bf16.mxu1 %v3456_v53  ;;  %v3525_v40 = vld [vmem:[#allocation2 + $0x604] ss:$16 sps:$4 sm:$0xff]   ;;  %v3523_v42 = vld [vmem:[#allocation2 + $0x600] ss:$16 sps:$4 sm:$0xff]   ;;  %v3537_v51 = vld [vmem:[#allocation2 + $0xcc] ss:$16 sps:$4 sm:$0xff]  }
  0x66   :  { %v3528_v43 = vld [vmem:[#allocation2 + $0x5e4] ss:$16 sps:$4 sm:$0xff]   ;;  %v3526_v46 = vld [vmem:[#allocation2 + $0x5e0] ss:$16 sps:$4 sm:$0xff]  }
  0x67   :  { %1506 = vmatpush2.bf16.msra.mxu0 %v3458_v54  ;;  %v107_v44 = vld [vmem:[%s4234_s0 + $0x30] sm:$0xff]  ;;  %v3535_v54 = vld [vmem:[#allocation2 + $0xc8] ss:$16 sps:$4 sm:$0xff]  }
  0x68   :  { %1547 = vmatpush2.bf16.msra.mxu1 %v3459_v55  ;;  %1507 = vmatprep.subr.bf16.mxu0 %v3460_v56  ;;  %v4138_v47 = vpack.c.bf16 %v107_v44, %v107_v44  ;;  %v3534_v50 = vld [vmem:[#allocation2 + $0x5c4] ss:$16 sps:$4 sm:$0xff]   ;;  %v3532_v53 = vld [vmem:[#allocation2 + $0x5c0] ss:$16 sps:$4 sm:$0xff]   ;;  %v3543_v56 = vld [vmem:[#allocation2 + $0xac] ss:$16 sps:$4 sm:$0xff]  }
  0x69   :  { %1548 = vmatprep.subr.bf16.mxu1 %v3462_v57  ;;  %v3540_v55 = vld [vmem:[#allocation2 + $0x5a4] ss:$16 sps:$4 sm:$0xff]   ;;  %v3538_v57 = vld [vmem:[#allocation2 + $0x5a0] ss:$16 sps:$4 sm:$0xff]   ;;  %v3615_v44 = vld [vmem:[#allocation2 + $0x22c] ss:$16 sps:$4 sm:$0xff]  }
  0x6a   :  { %v3556_v4 = vld [vmem:[#allocation2 + $0x540] ss:$16 sps:$4 sm:$0xff]  }
  0x6b   :  { %1508 = vmatpush2.bf16.msra.mxu0 %v3464_v58  ;;  %v3541_v58 = vld [vmem:[#allocation2 + $0xa8] ss:$16 sps:$4 sm:$0xff]  }
  0x6c   :  { %1549 = vmatpush2.bf16.msra.mxu1 %v3465_v59  ;;  %1509 = vmatprep.subr.bf16.mxu0 %v3466_v60  ;;  %v3546_v59 = vld [vmem:[#allocation2 + $0x584] ss:$16 sps:$4 sm:$0xff]   ;;  %v3549_v60 = vld [vmem:[#allocation2 + $0x8c] ss:$16 sps:$4 sm:$0xff]  }
  0x6d   :  { %1550 = vmatprep.subr.bf16.mxu1 %v3468_v61  ;;  %v3544_v61 = vld [vmem:[#allocation2 + $0x580] ss:$16 sps:$4 sm:$0xff]  }
  0x6f   :  { %1510 = vmatpush2.bf16.msra.mxu0 %v3470_v62  ;;  %v3547_v62 = vld [vmem:[#allocation2 + $0x88] ss:$16 sps:$4 sm:$0xff]  }
  0x70   :  { %1551 = vmatpush2.bf16.msra.mxu1 %v3471_v63  ;;  %1511 = vmatprep.subr.bf16.mxu0 %v3472_v0  ;;  %v3552_v63 = vld [vmem:[#allocation2 + $0x564] ss:$16 sps:$4 sm:$0xff]   ;;  %v3555_v0 = vld [vmem:[#allocation2 + $0x6c] ss:$16 sps:$4 sm:$0xff]  }
  0x71   :  { %1552 = vmatprep.subr.bf16.mxu1 %v3474_v1  ;;  %v3550_v1 = vld [vmem:[#allocation2 + $0x560] ss:$16 sps:$4 sm:$0xff]  }
  0x73   :  { %1512 = vmatpush2.bf16.msra.mxu0 %v3476_v2  ;;  %v3558_v2 = vld [vmem:[#allocation2 + $0x544] ss:$16 sps:$4 sm:$0xff]  }
  0x74   :  { %1553 = vmatpush2.bf16.msra.mxu1 %v3477_v3  ;;  %1563 = vmatprep.subr.bf16.mxu0 %v3480_v6  ;;  %v3561_v3 = vld [vmem:[#allocation2 + $0x4c] ss:$16 sps:$4 sm:$0xff]   ;;  %v3564_v6 = vld [vmem:[#allocation2 + $0x524] ss:$16 sps:$4 sm:$0xff]  }
  0x75   :  { %1604 = vmatprep.subr.bf16.mxu1 %v3483_v7  ;;  %v3567_v7 = vld [vmem:[#allocation2 + $0x2c] ss:$16 sps:$4 sm:$0xff]  }
  0x76   :  { %1514 = vmatmul.mubr.bf16.vlgmr.msra.gmra.mxu0 %v4122_v8 }
  0x77   :  { %1555 = vmatmul.mubr.bf16.vlgmr.msra.gmra.mxu1 %v4124_v9  ;;  %1564 = vmatpush1.bf16.msra.mxu0 %v3478_v10  ;;  %v3562_v10 = vld [vmem:[#allocation2 + $0x520] ss:$16 sps:$4 sm:$0xff]  }
  0x78   :  { %1605 = vmatpush1.bf16.msra.mxu1 %v3481_v11  ;;  %1565 = vmatprep.subr.bf16.mxu0 %v3486_v12  ;;  %v3565_v11 = vld [vmem:[#allocation2 + $0x28] ss:$16 sps:$4 sm:$0xff]   ;;  %v3570_v12 = vld [vmem:[#allocation2 + $0x504] ss:$16 sps:$4 sm:$0xff]  }
  0x79   :  { %1606 = vmatprep.subr.bf16.mxu1 %v3489_v13  ;;  %1636 = vmatprep.mubr.bf16.mxu1 %v4012_v18  ;;  %v3573_v13 = vld [vmem:[#allocation2 + $0xc] ss:$16 sps:$4 sm:$0xff]  }
  0x7a   :  { %1595 = vmatprep.mubr.bf16.mxu0 %v4132_v39 }
  0x7b   :  { %1566 = vmatpush1.bf16.msra.mxu0 %v3484_v14  ;;  %v3568_v14 = vld [vmem:[#allocation2 + $0x500] ss:$16 sps:$4 sm:$0xff]  }
  0x7c   :  { %1607 = vmatpush1.bf16.msra.mxu1 %v3487_v15  ;;  %1567 = vmatprep.subr.bf16.mxu0 %v3492_v16  ;;  %v3571_v15 = vld [vmem:[#allocation2 + $0x8] ss:$16 sps:$4 sm:$0xff]   ;;  %v105_v16 = vld [vmem:[%s4234_s0 + $0x20] sm:$0xff] }
  0x7d   :  { %1608 = vmatprep.subr.bf16.mxu1 %v3495_v17  ;;  %v3576_v17 = vld [vmem:[#allocation2 + $0x1ec] ss:$16 sps:$4 sm:$0xff]  }
  0x7f   :  { %1568 = vmatpush1.bf16.msra.mxu0 %v3490_v19  ;;  %v3579_v19 = vld [vmem:[#allocation2 + $0x2ec] ss:$16 sps:$4 sm:$0xff]  }
  0x80   :  { %1609 = vmatpush1.bf16.msra.mxu1 %v3493_v20  ;;  %1569 = vmatprep.subr.bf16.mxu0 %v3498_v21  ;;  %v4145_v20 = vpack.c.bf16 %v105_v16, %v105_v16  ;;  %v3574_v21 = vld [vmem:[#allocation2 + $0x1e8] ss:$16 sps:$4 sm:$0xff]  }
  0x81   :  { %1610 = vmatprep.subr.bf16.mxu1 %v3501_v22  ;;  %v3577_v22 = vld [vmem:[#allocation2 + $0x2e8] ss:$16 sps:$4 sm:$0xff]  }
  0x82   :  { %v3661_v16 = vld [vmem:[#allocation2 + $0x428] ss:$16 sps:$4 sm:$0xff]  }
  0x83   :  { %1570 = vmatpush1.bf16.msra.mxu0 %v3496_v23  ;;  %v3582_v23 = vld [vmem:[#allocation2 + $0x1cc] ss:$16 sps:$4 sm:$0xff]  }
  0x84   :  { %1611 = vmatpush1.bf16.msra.mxu1 %v3499_v24  ;;  %1571 = vmatprep.subr.bf16.mxu0 %v3504_v25  ;;  %v3585_v24 = vld [vmem:[#allocation2 + $0x2cc] ss:$16 sps:$4 sm:$0xff]   ;;  %v3580_v25 = vld [vmem:[#allocation2 + $0x1c8] ss:$16 sps:$4 sm:$0xff]  }
  0x85   :  { %1612 = vmatprep.subr.bf16.mxu1 %v3507_v26  ;;  %v3583_v26 = vld [vmem:[#allocation2 + $0x2c8] ss:$16 sps:$4 sm:$0xff]  }
  0x87   :  { %1572 = vmatpush1.bf16.msra.mxu0 %v3502_v27  ;;  %v3588_v27 = vld [vmem:[#allocation2 + $0x1ac] ss:$16 sps:$4 sm:$0xff]  }
  0x88   :  { %1613 = vmatpush1.bf16.msra.mxu1 %v3505_v28  ;;  %1573 = vmatprep.subr.bf16.mxu0 %v3510_v29  ;;  %v3591_v28 = vld [vmem:[#allocation2 + $0x2ac] ss:$16 sps:$4 sm:$0xff]   ;;  %v3586_v29 = vld [vmem:[#allocation2 + $0x1a8] ss:$16 sps:$4 sm:$0xff]  }
  0x89   :  { %1614 = vmatprep.subr.bf16.mxu1 %v3513_v30  ;;  %v3589_v30 = vld [vmem:[#allocation2 + $0x2a8] ss:$16 sps:$4 sm:$0xff]  }
  0x8b   :  { %1574 = vmatpush1.bf16.msra.mxu0 %v3508_v31  ;;  %v3594_v31 = vld [vmem:[#allocation2 + $0x18c] ss:$16 sps:$4 sm:$0xff]  }
  0x8c   :  { %1615 = vmatpush1.bf16.msra.mxu1 %v3511_v32  ;;  %1575 = vmatprep.subr.bf16.mxu0 %v3516_v33  ;;  %v3597_v32 = vld [vmem:[#allocation2 + $0x28c] ss:$16 sps:$4 sm:$0xff]   ;;  %v3592_v33 = vld [vmem:[#allocation2 + $0x188] ss:$16 sps:$4 sm:$0xff]  }
  0x8d   :  { %1616 = vmatprep.subr.bf16.mxu1 %v3519_v34  ;;  %v3595_v34 = vld [vmem:[#allocation2 + $0x288] ss:$16 sps:$4 sm:$0xff]  }
  0x8f   :  { %1576 = vmatpush1.bf16.msra.mxu0 %v3514_v35  ;;  %v3600_v35 = vld [vmem:[#allocation2 + $0x16c] ss:$16 sps:$4 sm:$0xff]  }
  0x90   :  { %1617 = vmatpush1.bf16.msra.mxu1 %v3517_v37  ;;  %1577 = vmatprep.subr.bf16.mxu0 %v3522_v38  ;;  %v3598_v37 = vld [vmem:[#allocation2 + $0x168] ss:$16 sps:$4 sm:$0xff]   ;;  %v3606_v38 = vld [vmem:[#allocation2 + $0x14c] ss:$16 sps:$4 sm:$0xff]  }
  0x91   :  { %1618 = vmatprep.subr.bf16.mxu1 %v3525_v40  ;;  %v3609_v40 = vld [vmem:[#allocation2 + $0x24c] ss:$16 sps:$4 sm:$0xff]  }
  0x93   :  { %1578 = vmatpush1.bf16.msra.mxu0 %v3520_v41  ;;  %v3604_v41 = vld [vmem:[#allocation2 + $0x148] ss:$16 sps:$4 sm:$0xff]  }
  0x94   :  { %1619 = vmatpush1.bf16.msra.mxu1 %v3523_v42  ;;  %1579 = vmatprep.subr.bf16.mxu0 %v3528_v43  ;;  %v3607_v42 = vld [vmem:[#allocation2 + $0x248] ss:$16 sps:$4 sm:$0xff]   ;;  %v3612_v43 = vld [vmem:[#allocation2 + $0x12c] ss:$16 sps:$4 sm:$0xff]  }
  0x95   :  { %1645 = vmatprep.subr.bf16.mxu1 %v3531_v45  ;;  %v3610_v45 = vld [vmem:[#allocation2 + $0x128] ss:$16 sps:$4 sm:$0xff]  }
  0x97   :  { %1637 = vmatmul.mubr.bf16.vlgmr.msra.gmra.mxu1 %v4138_v47  ;;  %1580 = vmatpush2.bf16.msra.mxu0 %v3526_v46  ;;  %v3613_v46 = vld [vmem:[#allocation2 + $0x228] ss:$16 sps:$4 sm:$0xff]  }
  0x98   :  { %1646 = vmatpush1.bf16.msra.mxu1 %v3529_v48  ;;  %1581 = vmatprep.subr.bf16.mxu0 %v3534_v50  ;;  %v3618_v48 = vld [vmem:[#allocation2 + $0x10c] ss:$16 sps:$4 sm:$0xff]  }
  0x99   :  { %1647 = vmatprep.subr.bf16.mxu1 %v3537_v51  ;;  %1677 = vmatprep.mubr.bf16.mxu1 %v4107_v49  ;;  %v3553_v49 = vld [vmem:[#allocation2 + $0x68] ss:$16 sps:$4 sm:$0xff]   ;;  %v3621_v50 = vld [vmem:[#allocation2 + $0x20c] ss:$16 sps:$4 sm:$0xff]  }
  0x9a   :  { %v3616_v51 = vld [vmem:[#allocation2 + $0x108] ss:$16 sps:$4 sm:$0xff]  }
  0x9b   :  { %1582 = vmatpush2.bf16.msra.mxu0 %v3532_v53  ;;  %v3619_v53 = vld [vmem:[#allocation2 + $0x208] ss:$16 sps:$4 sm:$0xff]  }
  0x9c   :  { %1648 = vmatpush1.bf16.msra.mxu1 %v3535_v54  ;;  %1583 = vmatprep.subr.bf16.mxu0 %v3540_v55  ;;  %v3624_v54 = vld [vmem:[#allocation2 + $0x3ec] ss:$16 sps:$4 sm:$0xff]  }
  0x9d   :  { %1649 = vmatprep.subr.bf16.mxu1 %v3543_v56  ;;  %v3627_v55 = vld [vmem:[#allocation2 + $0x4ec] ss:$16 sps:$4 sm:$0xff]   ;;  %v3622_v56 = vld [vmem:[#allocation2 + $0x3e8] ss:$16 sps:$4 sm:$0xff]  }
  0x9f   :  { %1584 = vmatpush2.bf16.msra.mxu0 %v3538_v57  ;;  %v3625_v57 = vld [vmem:[#allocation2 + $0x4e8] ss:$16 sps:$4 sm:$0xff]  }
  0xa0   :  { %1650 = vmatpush1.bf16.msra.mxu1 %v3541_v58  ;;  %1585 = vmatprep.subr.bf16.mxu0 %v3546_v59  ;;  %v3630_v58 = vld [vmem:[#allocation2 + $0x3cc] ss:$16 sps:$4 sm:$0xff]  }
  0xa1   :  { %1651 = vmatprep.subr.bf16.mxu1 %v3549_v60  ;;  %v3633_v59 = vld [vmem:[#allocation2 + $0x4cc] ss:$16 sps:$4 sm:$0xff]   ;;  %v3628_v60 = vld [vmem:[#allocation2 + $0x3c8] ss:$16 sps:$4 sm:$0xff]  }
  0xa3   :  { %1586 = vmatpush2.bf16.msra.mxu0 %v3544_v61  ;;  %v3631_v61 = vld [vmem:[#allocation2 + $0x4c8] ss:$16 sps:$4 sm:$0xff]  }
  0xa4   :  { %1652 = vmatpush1.bf16.msra.mxu1 %v3547_v62  ;;  %1587 = vmatprep.subr.bf16.mxu0 %v3552_v63  ;;  %v3636_v62 = vld [vmem:[#allocation2 + $0x3ac] ss:$16 sps:$4 sm:$0xff]  }
  0xa5   :  { %1653 = vmatprep.subr.bf16.mxu1 %v3555_v0  ;;  %v3639_v63 = vld [vmem:[#allocation2 + $0x4ac] ss:$16 sps:$4 sm:$0xff]   ;;  %v3634_v0 = vld [vmem:[#allocation2 + $0x3a8] ss:$16 sps:$4 sm:$0xff]  }
  0xa7   :  { %1588 = vmatpush2.bf16.msra.mxu0 %v3550_v1  ;;  %v3637_v1 = vld [vmem:[#allocation2 + $0x4a8] ss:$16 sps:$4 sm:$0xff]  }
  0xa8   :  { %1654 = vmatpush1.bf16.msra.mxu1 %v3553_v49  ;;  %1589 = vmatprep.subr.bf16.mxu0 %v3558_v2  ;;  %v3642_v49 = vld [vmem:[#allocation2 + $0x38c] ss:$16 sps:$4 sm:$0xff]  }
  0xa9   :  { %1655 = vmatprep.subr.bf16.mxu1 %v3561_v3  ;;  %v3645_v2 = vld [vmem:[#allocation2 + $0x48c] ss:$16 sps:$4 sm:$0xff]   ;;  %v3640_v3 = vld [vmem:[#allocation2 + $0x388] ss:$16 sps:$4 sm:$0xff]  }
  0xab   :  { %1590 = vmatpush2.bf16.msra.mxu0 %v3556_v4  ;;  %v3648_v4 = vld [vmem:[#allocation2 + $0x36c] ss:$16 sps:$4 sm:$0xff]  }
  0xac   :  { %1656 = vmatpush1.bf16.msra.mxu1 %v3559_v5  ;;  %1591 = vmatprep.subr.bf16.mxu0 %v3564_v6  ;;  %v3651_v5 = vld [vmem:[#allocation2 + $0x46c] ss:$16 sps:$4 sm:$0xff]   ;;  %v3646_v6 = vld [vmem:[#allocation2 + $0x368] ss:$16 sps:$4 sm:$0xff]  }
  0xad   :  { %1657 = vmatprep.subr.bf16.mxu1 %v3567_v7  ;;  %v3649_v7 = vld [vmem:[#allocation2 + $0x468] ss:$16 sps:$4 sm:$0xff]  }
  0xaf   :  { %1592 = vmatpush2.bf16.msra.mxu0 %v3562_v10  ;;  %v3654_v10 = vld [vmem:[#allocation2 + $0x34c] ss:$16 sps:$4 sm:$0xff]  }
  0xb0   :  { %1658 = vmatpush1.bf16.msra.mxu1 %v3565_v11  ;;  %1593 = vmatprep.subr.bf16.mxu0 %v3570_v12  ;;  %v3657_v11 = vld [vmem:[#allocation2 + $0x44c] ss:$16 sps:$4 sm:$0xff]   ;;  %v3655_v12 = vld [vmem:[#allocation2 + $0x448] ss:$16 sps:$4 sm:$0xff]  }
  0xb1   :  { %1659 = vmatprep.subr.bf16.mxu1 %v3573_v13  ;;  %v3660_v13 = vld [vmem:[#allocation2 + $0x32c] ss:$16 sps:$4 sm:$0xff]  }
  0xb3   :  { %1594 = vmatpush2.bf16.msra.mxu0 %v3568_v14  ;;  %v3663_v14 = vld [vmem:[#allocation2 + $0x42c] ss:$16 sps:$4 sm:$0xff]  }
  0xb4   :  { %1660 = vmatpush1.bf16.msra.mxu1 %v3571_v15  ;;  %1686 = vmatprep.subr.bf16.mxu0 %v3579_v19  ;;  %v3658_v15 = vld [vmem:[#allocation2 + $0x328] ss:$16 sps:$4 sm:$0xff]   ;;  %v3669_v19 = vld [vmem:[#allocation2 + $0x40c] ss:$16 sps:$4 sm:$0xff]  }
  0xb5   :  { %1661 = vmatprep.subr.bf16.mxu1 %v3576_v17  ;;  %v3666_v17 = vld [vmem:[#allocation2 + $0x30c] ss:$16 sps:$4 sm:$0xff]  }
  0xb6   :  { %1596 = vmatmul.mubr.bf16.vlgmr.msra.gmra.mxu0 %v4145_v20 }
  0xb7   :  { %1687 = vmatpush1.bf16.msra.mxu0 %v3577_v22  ;;  %1718 = vmatprep.mubr.bf16.mxu0 %v4112_v52  ;;  %v3601_v52 = vld [vmem:[#allocation2 + $0x268] ss:$16 sps:$4 sm:$0xff]  }
  0xb8   :  { %1662 = vmatpush2.bf16.msra.mxu1 %v3574_v21  ;;  %1688 = vmatprep.subr.bf16.mxu0 %v3585_v24  ;;  %v3664_v21 = vld [vmem:[#allocation2 + $0x308] ss:$16 sps:$4 sm:$0xff]   ;;  %v3675_v24 = vld [vmem:[#allocation2 + $0x6ec] ss:$16 sps:$4 sm:$0xff]  }
  0xb9   :  { %1663 = vmatprep.subr.bf16.mxu1 %v3582_v23  ;;  %v3667_v22 = vld [vmem:[#allocation2 + $0x408] ss:$16 sps:$4 sm:$0xff]   ;;  %v3672_v23 = vld [vmem:[#allocation2 + $0x5ec] ss:$16 sps:$4 sm:$0xff]  }
  0xbb   :  { %1689 = vmatpush1.bf16.msra.mxu0 %v3583_v26  ;;  %v3673_v26 = vld [vmem:[#allocation2 + $0x6e8] ss:$16 sps:$4 sm:$0xff]  }
  0xbc   :  { %1664 = vmatpush2.bf16.msra.mxu1 %v3580_v25  ;;  %1690 = vmatprep.subr.bf16.mxu0 %v3591_v28  ;;  %v3670_v25 = vld [vmem:[#allocation2 + $0x5e8] ss:$16 sps:$4 sm:$0xff]   ;;  %v3681_v28 = vld [vmem:[#allocation2 + $0x6cc] ss:$16 sps:$4 sm:$0xff]  }
  0xbd   :  { %1665 = vmatprep.subr.bf16.mxu1 %v3588_v27  ;;  %v3678_v27 = vld [vmem:[#allocation2 + $0x5cc] ss:$16 sps:$4 sm:$0xff]  }
  0xbf   :  { %1691 = vmatpush1.bf16.msra.mxu0 %v3589_v30  ;;  %v3679_v30 = vld [vmem:[#allocation2 + $0x6c8] ss:$16 sps:$4 sm:$0xff]  }
  0xc0   :  { %1666 = vmatpush2.bf16.msra.mxu1 %v3586_v29  ;;  %1692 = vmatprep.subr.bf16.mxu0 %v3597_v32  ;;  %v3676_v29 = vld [vmem:[#allocation2 + $0x5c8] ss:$16 sps:$4 sm:$0xff]   ;;  %v3687_v32 = vld [vmem:[#allocation2 + $0x6ac] ss:$16 sps:$4 sm:$0xff]  }
  0xc1   :  { %1667 = vmatprep.subr.bf16.mxu1 %v3594_v31  ;;  %v3684_v31 = vld [vmem:[#allocation2 + $0x5ac] ss:$16 sps:$4 sm:$0xff]  }
  0xc3   :  { %1693 = vmatpush1.bf16.msra.mxu0 %v3595_v34  ;;  %v3685_v34 = vld [vmem:[#allocation2 + $0x6a8] ss:$16 sps:$4 sm:$0xff]  }
  0xc4   :  { %1668 = vmatpush2.bf16.msra.mxu1 %v3592_v33  ;;  %1694 = vmatprep.subr.bf16.mxu0 %v3603_v36  ;;  %v3682_v33 = vld [vmem:[#allocation2 + $0x5a8] ss:$16 sps:$4 sm:$0xff]   ;;  %v3693_v36 = vld [vmem:[#allocation2 + $0x68c] ss:$16 sps:$4 sm:$0xff]  }
  0xc5   :  { %1669 = vmatprep.subr.bf16.mxu1 %v3600_v35  ;;  %v3690_v35 = vld [vmem:[#allocation2 + $0x58c] ss:$16 sps:$4 sm:$0xff]  }
  0xc7   :  { %1695 = vmatpush1.bf16.msra.mxu0 %v3601_v52  ;;  %v3691_v52 = vld [vmem:[#allocation2 + $0x688] ss:$16 sps:$4 sm:$0xff]  }
  0xc8   :  { %1670 = vmatpush2.bf16.msra.mxu1 %v3598_v37  ;;  %1696 = vmatprep.subr.bf16.mxu0 %v3609_v40  ;;  %v3688_v37 = vld [vmem:[#allocation2 + $0x588] ss:$16 sps:$4 sm:$0xff]  }
  0xc9   :  { %1671 = vmatprep.subr.bf16.mxu1 %v3606_v38  ;;  %v3696_v38 = vld [vmem:[#allocation2 + $0x56c] ss:$16 sps:$4 sm:$0xff]   ;;  %v3694_v40 = vld [vmem:[#allocation2 + $0x568] ss:$16 sps:$4 sm:$0xff]  }
  0xcb   :  { %1697 = vmatpush1.bf16.msra.mxu0 %v3607_v42  ;;  %v3702_v42 = vld [vmem:[#allocation2 + $0x54c] ss:$16 sps:$4 sm:$0xff]  }
  0xcc   :  { %1672 = vmatpush2.bf16.msra.mxu1 %v3604_v41  ;;  %1698 = vmatprep.subr.bf16.mxu0 %v3615_v44  ;;  %v3697_v41 = vld [vmem:[#allocation2 + $0x668] ss:$16 sps:$4 sm:$0xff]  }
  0xcd   :  { %1673 = vmatprep.subr.bf16.mxu1 %v3612_v43  ;;  %v3705_v43 = vld [vmem:[#allocation2 + $0x64c] ss:$16 sps:$4 sm:$0xff]   ;;  %v3703_v44 = vld [vmem:[#allocation2 + $0x648] ss:$16 sps:$4 sm:$0xff]  }
  0xcf   :  { %1699 = vmatpush1.bf16.msra.mxu0 %v3613_v46  ;;  %v3711_v46 = vld [vmem:[#allocation2 + $0x62c] ss:$16 sps:$4 sm:$0xff]  }
  0xd0   :  { %1674 = vmatpush2.bf16.msra.mxu1 %v3610_v45  ;;  %1700 = vmatprep.subr.bf16.mxu0 %v3621_v50  ;;  %v3708_v45 = vld [vmem:[#allocation2 + $0x52c] ss:$16 sps:$4 sm:$0xff]   ;;  %v3709_v50 = vld [vmem:[#allocation2 + $0x628] ss:$16 sps:$4 sm:$0xff]  }
  0xd1   :  { %1675 = vmatprep.subr.bf16.mxu1 %v3618_v48  ;;  %v3706_v48 = vld [vmem:[#allocation2 + $0x528] ss:$16 sps:$4 sm:$0xff]  }
  0xd3   :  { %1701 = vmatpush1.bf16.msra.mxu0 %v3619_v53  ;;  %v3717_v53 = vld [vmem:[#allocation2 + $0x60c] ss:$16 sps:$4 sm:$0xff]  }
  0xd4   :  { %1676 = vmatpush2.bf16.msra.mxu1 %v3616_v51  ;;  %1702 = vmatprep.subr.bf16.mxu0 %v3624_v54  ;;  %v3714_v51 = vld [vmem:[#allocation2 + $0x50c] ss:$16 sps:$4 sm:$0xff]   ;;  %v3712_v54 = vld [vmem:[#allocation2 + $0x508] ss:$16 sps:$4 sm:$0xff]  }
  0xd5   :  { %1727 = vmatprep.subr.bf16.mxu1 %v3627_v55  ;;  %v3715_v55 = vld [vmem:[#allocation2 + $0x608] ss:$16 sps:$4 sm:$0xff]  }
  0xd7   :  { %1678 = vmatmul.mubr.bf16.vlgmr.msra.gmra.mxu1 %v4122_v8  ;;  %1703 = vmatpush2.bf16.msra.mxu0 %v3622_v56  ;;  %v3643_v8 = vld [vmem:[#allocation2 + $0x488] ss:$16 sps:$4 sm:$0xff]   ;;  %v3720_v56 = vld [vmem:[#allocation5 + $0x74] ss:$8 sps:$4 sm:$0xff]  }
  0xd8   :  { %1728 = vmatpush1.bf16.msra.mxu1 %v3625_v57  ;;  %1704 = vmatprep.subr.bf16.mxu0 %v3630_v58  ;;  %v3718_v57 = vld [vmem:[#allocation5 + $0x70] ss:$8 sps:$4 sm:$0xff]   ;;  %v3723_v58 = vld [vmem:[#allocation5 + $0x64] ss:$8 sps:$4 sm:$0xff]  }
  0xd9   :  { %1729 = vmatprep.subr.bf16.mxu1 %v3633_v59  ;;  %1759 = vmatprep.mubr.bf16.mxu1 %v4132_v39  ;;  %v3652_v39 = vld [vmem:[#allocation2 + $0x348] ss:$16 sps:$4 sm:$0xff]  }
  0xda   :  { %v3721_v59 = vld [vmem:[#allocation5 + $0x60] ss:$8 sps:$4 sm:$0xff]  }
  0xdb   :  { %1705 = vmatpush2.bf16.msra.mxu0 %v3628_v60  ;;  %v3726_v60 = vld [vmem:[#allocation5 + $0x54] ss:$8 sps:$4 sm:$0xff]  }
  0xdc   :  { %1730 = vmatpush1.bf16.msra.mxu1 %v3631_v61  ;;  %1706 = vmatprep.subr.bf16.mxu0 %v3636_v62  ;;  %v3724_v61 = vld [vmem:[#allocation5 + $0x50] ss:$8 sps:$4 sm:$0xff]   ;;  %v3729_v62 = vld [vmem:[#allocation5 + $0x44] ss:$8 sps:$4 sm:$0xff]  }
  0xdd   :  { %1731 = vmatprep.subr.bf16.mxu1 %v3639_v63  ;;  %v3766_v63 = vld [vmem:[#allocation5 + $0x170] ss:$8 sps:$4 sm:$0xff]  }
  0xdf   :  { %1707 = vmatpush2.bf16.msra.mxu0 %v3634_v0  ;;  %v3768_v0 = vld [vmem:[#allocation5 + $0x174] ss:$8 sps:$4 sm:$0xff]  }
  0xe0   :  { %1732 = vmatpush1.bf16.msra.mxu1 %v3637_v1  ;;  %1708 = vmatprep.subr.bf16.mxu0 %v3642_v49  ;;  %v3771_v1 = vld [vmem:[#allocation5 + $0x164] ss:$8 sps:$4 sm:$0xff]   ;;  %v3727_v49 = vld [vmem:[#allocation5 + $0x40] ss:$8 sps:$4 sm:$0xff]  }
  0xe1   :  { %1733 = vmatprep.subr.bf16.mxu1 %v3645_v2  ;;  %v3769_v2 = vld [vmem:[#allocation5 + $0x160] ss:$8 sps:$4 sm:$0xff]  }
  0xe3   :  { %1709 = vmatpush2.bf16.msra.mxu0 %v3640_v3  ;;  %v3730_v3 = vld [vmem:[#allocation5 + $0x30] ss:$8 sps:$4 sm:$0xff]  }
  0xe4   :  { %1734 = vmatpush1.bf16.msra.mxu1 %v3643_v8  ;;  %1710 = vmatprep.subr.bf16.mxu0 %v3648_v4  ;;  %v3772_v8 = vld [vmem:[#allocation5 + $0x150] ss:$8 sps:$4 sm:$0xff]   ;;  %v3735_v4 = vld [vmem:[#allocation5 + $0x24] ss:$8 sps:$4 sm:$0xff]  }
  0xe5   :  { %1735 = vmatprep.subr.bf16.mxu1 %v3651_v5  ;;  %v3777_v5 = vld [vmem:[#allocation5 + $0x144] ss:$8 sps:$4 sm:$0xff]  }
  0xe7   :  { %1711 = vmatpush2.bf16.msra.mxu0 %v3646_v6  ;;  %v3733_v6 = vld [vmem:[#allocation5 + $0x20] ss:$8 sps:$4 sm:$0xff]  }
  0xe8   :  { %1736 = vmatpush1.bf16.msra.mxu1 %v3649_v7  ;;  %1712 = vmatprep.subr.bf16.mxu0 %v3654_v10  ;;  %v3775_v7 = vld [vmem:[#allocation5 + $0x140] ss:$8 sps:$4 sm:$0xff]   ;;  %v3738_v10 = vld [vmem:[#allocation5 + $0x14] ss:$8 sps:$4 sm:$0xff]  }
  0xe9   :  { %1737 = vmatprep.subr.bf16.mxu1 %v3657_v11  ;;  %v3780_v11 = vld [vmem:[#allocation5 + $0x134] ss:$8 sps:$4 sm:$0xff]  }
  0xeb   :  { %1713 = vmatpush2.bf16.msra.mxu0 %v3652_v39  ;;  %v3736_v39 = vld [vmem:[#allocation5 + $0x10] ss:$8 sps:$4 sm:$0xff]  }
  0xec   :  { %1738 = vmatpush1.bf16.msra.mxu1 %v3655_v12  ;;  %1714 = vmatprep.subr.bf16.mxu0 %v3660_v13  ;;  %v3778_v12 = vld [vmem:[#allocation5 + $0x130] ss:$8 sps:$4 sm:$0xff]   ;;  %v3741_v13 = vld [vmem:[#allocation5 + $0x4] ss:$8 sps:$4 sm:$0xff]  }
  0xed   :  { %1739 = vmatprep.subr.bf16.mxu1 %v3663_v14  ;;  %v3739_v14 = vld [vmem:[#allocation5] ss:$8 sps:$4 sm:$0xff]  }
  0xef   :  { %1715 = vmatpush2.bf16.msra.mxu0 %v3658_v15  ;;  %v3744_v15 = vld [vmem:[#allocation5 + $0xf4] ss:$8 sps:$4 sm:$0xff]  }
  0xf0   :  { %1740 = vmatpush1.bf16.msra.mxu1 %v3661_v16  ;;  %1716 = vmatprep.subr.bf16.mxu0 %v3666_v17  ;;  %v3742_v16 = vld [vmem:[#allocation5 + $0xf0] ss:$8 sps:$4 sm:$0xff]   ;;  %v3747_v17 = vld [vmem:[#allocation5 + $0xe4] ss:$8 sps:$4 sm:$0xff]  }
  0xf1   :  { %1741 = vmatprep.subr.bf16.mxu1 %v3669_v19  ;;  %v3783_v19 = vld [vmem:[#allocation5 + $0x124] ss:$8 sps:$4 sm:$0xff]  }
  0xf3   :  { %1717 = vmatpush2.bf16.msra.mxu0 %v3664_v21  ;;  %v3781_v21 = vld [vmem:[#allocation5 + $0x120] ss:$8 sps:$4 sm:$0xff]  }
  0xf4   :  { %1742 = vmatpush1.bf16.msra.mxu1 %v3667_v22  ;;  %1768 = vmatprep.subr.bf16.mxu0 %v3675_v24  ;;  %v3745_v24 = vld [vmem:[#allocation5 + $0xe0] ss:$8 sps:$4 sm:$0xff]  }
  0xf5   :  { %1743 = vmatprep.subr.bf16.mxu1 %v3672_v23 }
  0xf6   :  { %1719 = vmatmul.mubr.bf16.vlgmr.msra.gmra.mxu0 %v4124_v9  ;;  %v3699_v9 = vld [vmem:[#allocation2 + $0x66c] ss:$16 sps:$4 sm:$0xff]  }
  0xf7   :  { %1769 = vmatpush1.bf16.msra.mxu0 %v3673_v26  ;;  %1800 = vmatprep.mubr.bf16.mxu0 %v4012_v18  ;;  %v3700_v18 = vld [vmem:[#allocation2 + $0x548] ss:$16 sps:$4 sm:$0xff]  }
  0xf8   :  { %1744 = vmatpush2.bf16.msra.mxu1 %v3670_v25  ;;  %1770 = vmatprep.subr.bf16.mxu0 %v3681_v28  ;;  %v3786_v28 = vld [vmem:[#allocation5 + $0x114] ss:$8 sps:$4 sm:$0xff]  }
  0xf9   :  { %1745 = vmatprep.subr.bf16.mxu1 %v3678_v27  ;;  %v3750_v27 = vld [vmem:[#allocation5 + $0xd4] ss:$8 sps:$4 sm:$0xff]  }
  0xfb   :  { %1771 = vmatpush1.bf16.msra.mxu0 %v3679_v30 }
  0xfc   :  { %1746 = vmatpush2.bf16.msra.mxu1 %v3676_v29  ;;  %1772 = vmatprep.subr.bf16.mxu0 %v3687_v32  ;;  %v3784_v29 = vld [vmem:[#allocation5 + $0x110] ss:$8 sps:$4 sm:$0xff]  }
  0xfd   :  { %1747 = vmatprep.subr.bf16.mxu1 %v3684_v31  ;;  %v3748_v32 = vld [vmem:[#allocation5 + $0xd0] ss:$8 sps:$4 sm:$0xff]  }
  0xff   :  { %1773 = vmatpush1.bf16.msra.mxu0 %v3685_v34 }
 0x100   :  { %1748 = vmatpush2.bf16.msra.mxu1 %v3682_v33  ;;  %1774 = vmatprep.subr.bf16.mxu0 %v3693_v36  ;;  %v3787_v36 = vld [vmem:[#allocation5 + $0x100] ss:$8 sps:$4 sm:$0xff]  }
 0x101   :  { %1749 = vmatprep.subr.bf16.mxu1 %v3690_v35  ;;  %v3753_v35 = vld [vmem:[#allocation5 + $0xc4] ss:$8 sps:$4 sm:$0xff]  }
 0x103   :  { %1775 = vmatpush1.bf16.msra.mxu0 %v3691_v52  ;;  %v3792_v52 = vld [vmem:[#allocation5 + $0x1f4] ss:$8 sps:$4 sm:$0xff]  }
 0x104   :  { %1750 = vmatpush2.bf16.msra.mxu1 %v3688_v37  ;;  %1776 = vmatprep.subr.bf16.mxu0 %v3699_v9  ;;  %v3789_v37 = vld [vmem:[#allocation5 + $0x104] ss:$8 sps:$4 sm:$0xff]   ;;  %v3790_v9 = vld [vmem:[#allocation5 + $0x1f0] ss:$8 sps:$4 sm:$0xff]  }
 0x105   :  { %1751 = vmatprep.subr.bf16.mxu1 %v3696_v38  ;;  %v3751_v38 = vld [vmem:[#allocation5 + $0xc0] ss:$8 sps:$4 sm:$0xff]  }
 0x107   :  { %1777 = vmatpush1.bf16.msra.mxu0 %v3697_v41  ;;  %v3795_v41 = vld [vmem:[#allocation5 + $0x1e4] ss:$8 sps:$4 sm:$0xff]  }
 0x108   :  { %1752 = vmatpush2.bf16.msra.mxu1 %v3694_v40  ;;  %1778 = vmatprep.subr.bf16.mxu0 %v3705_v43  ;;  %v3756_v40 = vld [vmem:[#allocation5 + $0xb4] ss:$8 sps:$4 sm:$0xff]   ;;  %v3793_v43 = vld [vmem:[#allocation5 + $0x1e0] ss:$8 sps:$4 sm:$0xff]  }
 0x109   :  { %1753 = vmatprep.subr.bf16.mxu1 %v3702_v42  ;;  %v3754_v42 = vld [vmem:[#allocation5 + $0xb0] ss:$8 sps:$4 sm:$0xff]  }
 0x10b   :  { %1779 = vmatpush1.bf16.msra.mxu0 %v3703_v44  ;;  %v3798_v44 = vld [vmem:[#allocation5 + $0x1d4] ss:$8 sps:$4 sm:$0xff]  }
 0x10c   :  { %1754 = vmatpush2.bf16.msra.mxu1 %v3700_v18  ;;  %1780 = vmatprep.subr.bf16.mxu0 %v3711_v46  ;;  %v3759_v18 = vld [vmem:[#allocation5 + $0xa4] ss:$8 sps:$4 sm:$0xff]   ;;  %v3796_v46 = vld [vmem:[#allocation5 + $0x1d0] ss:$8 sps:$4 sm:$0xff]  }
 0x10d   :  { %1755 = vmatprep.subr.bf16.mxu1 %v3708_v45  ;;  %v3757_v45 = vld [vmem:[#allocation5 + $0xa0] ss:$8 sps:$4 sm:$0xff]  }
 0x10f   :  { %1781 = vmatpush1.bf16.msra.mxu0 %v3709_v50  ;;  %v3801_v50 = vld [vmem:[#allocation5 + $0x1c4] ss:$8 sps:$4 sm:$0xff]  }
 0x110   :  { %1756 = vmatpush2.bf16.msra.mxu1 %v3706_v48  ;;  %1782 = vmatprep.subr.bf16.mxu0 %v3717_v53  ;;  %v3762_v48 = vld [vmem:[#allocation5 + $0x94] ss:$8 sps:$4 sm:$0xff]   ;;  %v3799_v53 = vld [vmem:[#allocation5 + $0x1c0] ss:$8 sps:$4 sm:$0xff]  }
 0x111   :  { %1757 = vmatprep.subr.bf16.mxu1 %v3714_v51  ;;  %v3760_v51 = vld [vmem:[#allocation5 + $0x90] ss:$8 sps:$4 sm:$0xff]  }
 0x113   :  { %1783 = vmatpush1.bf16.msra.mxu0 %v3715_v55  ;;  %v3804_v55 = vld [vmem:[#allocation5 + $0x1b4] ss:$8 sps:$4 sm:$0xff]  }
 0x114   :  { %1758 = vmatpush2.bf16.msra.mxu1 %v3712_v54  ;;  %2213 = vmatprep.subr.bf16.mxu0 %v3720_v56  ;;  %v3765_v54 = vld [vmem:[#allocation5 + $0x84] ss:$8 sps:$4 sm:$0xff]   ;;  %v3763_v56 = vld [vmem:[#allocation5 + $0x80] ss:$8 sps:$4 sm:$0xff]  }
 0x115   :  { %2254 = vmatprep.subr.bf16.mxu1 %v3768_v0 }
 0x116   :  { %1801 = vmatmul.mubr.bf16.vlgmr.msra.gmra.mxu0 %v4138_v47  ;;  %v3774_v47 = vld [vmem:[#allocation5 + $0x154] ss:$8 sps:$4 sm:$0xff]  }
 0x117   :  { %1760 = vmatmul.mubr.bf16.vlgmr.msra.gmra.mxu1 %v4145_v20  ;;  %2214 = vmatpush1.bf16.msra.mxu0 %v3718_v57  ;;  %v3732_v20 = vld [vmem:[#allocation5 + $0x34] ss:$8 sps:$4 sm:$0xff]   ;;  %v3802_v57 = vld [vmem:[#allocation5 + $0x1b0] ss:$8 sps:$4 sm:$0xff]  }
 0x118   :  { %2215 = vmatprep.subr.bf16.mxu0 %v3723_v58  ;;  %2255 = vmatpush1.bf16.msra.mxu1 %v3766_v63  ;;  %v3807_v58 = vld [vmem:[#allocation5 + $0x1a4] ss:$8 sps:$4 sm:$0xff]   ;;  %v3808_v63 = vld [vmem:[#allocation5 + $0x190] ss:$8 sps:$4 sm:$0xff]  }
 0x119   :  { %2256 = vmatprep.subr.bf16.mxu1 %v3771_v1 }
 0x11b   :  { %2216 = vmatpush1.bf16.msra.mxu0 %v3721_v59  ;;  %v3805_v59 = vld [vmem:[#allocation5 + $0x1a0] ss:$8 sps:$4 sm:$0xff]  }
 0x11c   :  { %2217 = vmatprep.subr.bf16.mxu0 %v3726_v60  ;;  %2257 = vmatpush1.bf16.msra.mxu1 %v3769_v2  ;;  %v3811_v2 = vld [vmem:[#allocation5 + $0x180] ss:$8 sps:$4 sm:$0xff]  }
 0x11d   :  { %2258 = vmatprep.subr.bf16.mxu1 %v3774_v47 }
 0x11f   :  { %2218 = vmatpush1.bf16.msra.mxu0 %v3724_v61 }
 0x120   :  { %2219 = vmatprep.subr.bf16.mxu0 %v3729_v62  ;;  %2259 = vmatpush1.bf16.msra.mxu1 %v3772_v8  ;;  %v3810_v62 = vld [vmem:[#allocation5 + $0x194] ss:$8 sps:$4 sm:$0xff]   ;;  %v339_v8 = vld [vmem:[%s4236_s2] sm:$0xf] }
 0x121   :  { %2260 = vmatprep.subr.bf16.mxu1 %v3777_v5 }
 0x123   :  { %2220 = vmatpush1.bf16.msra.mxu0 %v3727_v49  ;;  %v3813_v49 = vld [vmem:[#allocation5 + $0x184] ss:$8 sps:$4 sm:$0xff]  }
 0x124   :  { %2221 = vmatprep.subr.bf16.mxu0 %v3732_v20  ;;  %2261 = vmatpush1.bf16.msra.mxu1 %v3775_v7  ;;  %v341_v20 = vlaneseq }
 0x125   :  { %2262 = vmatprep.subr.bf16.mxu1 %v3780_v11 }
 0x126   :  { %v342_v47 = vshrl.u32 %v341_v20, 7  ;;  %v3834_v20 = vld [vmem:[#allocation7 + $0x14] ss:$8 sps:$4 sm:$0xff]  }
 0x127   :  { %2222 = vmatpush1.bf16.msra.mxu0 %v3730_v3 }
 0x128   :  { %2223 = vmatprep.subr.bf16.mxu0 %v3735_v4  ;;  %2263 = vmatpush1.bf16.msra.mxu1 %v3778_v12  ;;  %v4163_v3 = vsub.s32 0, %v342_v47  ;;  %v4168_v4 = vsub.s32 1, %v342_v47 }
 0x129   :  { %2264 = vmatprep.subr.bf16.mxu1 %v3783_v19 }
 0x12a   :  { %v344_v5 = vrot.slane %v339_v8, %v4163_v3 }
 0x12b   :  { %2224 = vmatpush1.bf16.msra.mxu0 %v3733_v6  ;;  %v348_v6 = vrot.slane %v339_v8, %v4168_v4 }
 0x12c   :  { %2225 = vmatprep.subr.bf16.mxu0 %v3738_v10  ;;  %2265 = vmatpush1.bf16.msra.mxu1 %v3781_v21 }
 0x12d   :  { %2266 = vmatprep.subr.bf16.mxu1 %v3786_v28 }
 0x12f   :  { %2226 = vmatpush1.bf16.msra.mxu0 %v3736_v39 }
 0x130   :  { %2227 = vmatprep.subr.bf16.mxu0 %v3741_v13  ;;  %2267 = vmatpush1.bf16.msra.mxu1 %v3784_v29 }
 0x131   :  { %2268 = vmatprep.subr.bf16.mxu1 %v3789_v37  ;;  %v351_v37 = vsub.s32 2, %v342_v47 }
 0x133   :  { %2228 = vmatpush1.bf16.msra.mxu0 %v3739_v14 }
 0x134   :  { %2229 = vmatprep.subr.bf16.mxu0 %v3744_v15  ;;  %2269 = vmatpush1.bf16.msra.mxu1 %v3787_v36  ;;  %v3819_v36 = vld [vmem:[#allocation7 + $0x64] ss:$8 sps:$4 sm:$0xff]  }
 0x135   :  { %2270 = vmatprep.subr.bf16.mxu1 %v3792_v52  ;;  %v3817_v52 = vld [vmem:[#allocation7 + $0x60] ss:$8 sps:$4 sm:$0xff]  }
 0x136   :  { %v4155_v22 = vpop.f32.mrf.mxu0 }
 0x137   :  { %v4157_v23 = vpop.f32.mrf.mxu1  ;;  %2230 = vmatpush2.bf16.msra.mxu0 %v3742_v16  ;;  %v1516_v7 = vadd.f32 %v4155_v22, %v344_v5  ;;  %v3832_v5 = vld [vmem:[#allocation7 + $0x10] ss:$8 sps:$4 sm:$0xff]  }
 0x138   :  { %v4159_v25 = vpop.f32.mrf.mxu0  ;;  %2231 = vmatprep.subr.bf16.mxu0 %v3747_v17  ;;  %2271 = vmatpush2.bf16.msra.mxu1 %v3790_v9  ;;  %v355_v9 = vsub.s32 3, %v342_v47 }
 0x139   :  { %v4161_v26 = vpop.f32.mrf.mxu1  ;;  %2272 = vmatprep.subr.bf16.mxu1 %v3795_v41  ;;  %v1518_v10 = vadd.f32 %v4159_v25, %v348_v6  ;;  %v1557_v11 = vadd.f32 %v4157_v23, %v1516_v7  ;;  %v3820_v41 = vld [vmem:[#allocation7 + $0x50] ss:$8 sps:$4 sm:$0xff]   ;;  %v3837_v7 = vld [vmem:[#allocation7 + $0x4] ss:$8 sps:$4 sm:$0xff]  }
 0x13a   :  { %v1519_v30 = vpop.f32.mrf.mxu0 }
 0x13b   :  { %v1560_v31 = vpop.f32.mrf.mxu1  ;;  %2232 = vmatpush2.bf16.msra.mxu0 %v3745_v24  ;;  %v1559_v12 = vadd.f32 %v4161_v26, %v1518_v10  ;;  %v3835_v10 = vld [vmem:[#allocation7] ss:$8 sps:$4 sm:$0xff]  }
 0x13c   :  { %v1520_v33 = vpop.f32.mrf.mxu0  ;;  %2233 = vmatprep.subr.bf16.mxu0 %v3750_v27  ;;  %2273 = vmatpush2.bf16.msra.mxu1 %v3793_v43  ;;  %v356_v43 = vrot.slane %v339_v8, %v355_v9 }
 0x13d   :  { %v1561_v34 = vpop.f32.mrf.mxu1  ;;  %2274 = vmatprep.subr.bf16.mxu1 %v3798_v44  ;;  %v3823_v44 = vld [vmem:[#allocation7 + $0x40] ss:$8 sps:$4 sm:$0xff]  }
 0x13e   :  { %v3814_v34 = vld [vmem:[#allocation7 + $0x70] ss:$8 sps:$4 sm:$0xff]  }
 0x13f   :  { %2234 = vmatpush2.bf16.msra.mxu0 %v3748_v32 }
 0x140   :  { %2235 = vmatprep.subr.bf16.mxu0 %v3753_v35  ;;  %2275 = vmatpush2.bf16.msra.mxu1 %v3796_v46  ;;  %v3816_v35 = vld [vmem:[#allocation7 + $0x74] ss:$8 sps:$4 sm:$0xff]  }
 0x141   :  { %2276 = vmatprep.subr.bf16.mxu1 %v3801_v50 }
 0x143   :  { %2236 = vmatpush2.bf16.msra.mxu0 %v3751_v38  ;;  %v3822_v38 = vld [vmem:[#allocation7 + $0x54] ss:$8 sps:$4 sm:$0xff]  }
 0x144   :  { %2237 = vmatprep.subr.bf16.mxu0 %v3756_v40  ;;  %2277 = vmatpush2.bf16.msra.mxu1 %v3799_v53  ;;  %v352_v40 = vrot.slane %v339_v8, %v351_v37  ;;  %v3871_v37 = vld [vmem:[#allocation8 + $0x18] sm:$0xff]  }
 0x145   :  { %2278 = vmatprep.subr.bf16.mxu1 %v3804_v55  ;;  %v3826_v55 = vld [vmem:[#allocation7 + $0x30] ss:$8 sps:$4 sm:$0xff]  }
 0x147   :  { %2238 = vmatpush2.bf16.msra.mxu0 %v3754_v42  ;;  %v3825_v42 = vld [vmem:[#allocation7 + $0x44] ss:$8 sps:$4 sm:$0xff]  }
 0x148   :  { %2239 = vmatprep.subr.bf16.mxu0 %v3759_v18  ;;  %2279 = vmatpush2.bf16.msra.mxu1 %v3802_v57 }
 0x149   :  { %2280 = vmatprep.subr.bf16.mxu1 %v3807_v58  ;;  %v3831_v58 = vld [vmem:[#allocation7 + $0x24] ss:$8 sps:$4 sm:$0xff]  }
 0x14b   :  { %2240 = vmatpush2.bf16.msra.mxu0 %v3757_v45  ;;  %v3828_v45 = vld [vmem:[#allocation7 + $0x34] ss:$8 sps:$4 sm:$0xff]  }
 0x14c   :  { %2241 = vmatprep.subr.bf16.mxu0 %v3762_v48  ;;  %2281 = vmatpush2.bf16.msra.mxu1 %v3805_v59 }
 0x14d   :  { %2282 = vmatprep.subr.bf16.mxu1 %v3810_v62 }
 0x14f   :  { %2242 = vmatpush2.bf16.msra.mxu0 %v3760_v51 }
 0x150   :  { %2243 = vmatprep.subr.bf16.mxu0 %v3765_v54  ;;  %2283 = vmatpush2.bf16.msra.mxu1 %v3808_v63 }
 0x151   :  { %2284 = vmatprep.subr.bf16.mxu1 %v3813_v49 }
 0x153   :  { %2244 = vmatpush2.bf16.msra.mxu0 %v3763_v56 }
 0x154   :  { %2285 = vmatpush2.bf16.msra.mxu1 %v3811_v2  ;;  %2503 = vmatprep.subr.bf16.mxu0 %v3816_v35  ;;  %v3869_v35 = vld [vmem:[#allocation8 + $0x20] sm:$0xff]  }
 0x157   :  { %v1638_v60 = vpop.f32.mrf.mxu1 }
 0x159   :  { %v1640_v61 = vpop.f32.mrf.mxu1 }
 0x15b   :  { %v1642_v0 = vpop.f32.mrf.mxu1 }
 0x15c   :  { %v3829_v0 = vld [vmem:[#allocation7 + $0x20] ss:$8 sps:$4 sm:$0xff]  }
 0x15d   :  { %v1643_v1 = vpop.f32.mrf.mxu1 }
 0x176   :  { %v1597_v39 = vpop.f32.mrf.mxu0 }
 0x177   :  { %v1598_v13 = vadd.f32 %v1597_v39, %v1557_v11  ;;  %v3840_v11 = vld [vmem:[#allocation7 + $0xf4] ss:$8 sps:$4 sm:$0xff]   ;;  %v3838_v39 = vld [vmem:[#allocation7 + $0xf0] ss:$8 sps:$4 sm:$0xff]  }
 0x178   :  { %v1599_v14 = vpop.f32.mrf.mxu0 }
 0x179   :  { %v1639_v15 = vadd.f32 %v1638_v60, %v1598_v13  ;;  %v1600_v16 = vadd.f32 %v1599_v14, %v1559_v12  ;;  %v3843_v12 = vld [vmem:[#allocation7 + $0xe4] ss:$8 sps:$4 sm:$0xff]   ;;  %v3841_v13 = vld [vmem:[#allocation7 + $0xe0] ss:$8 sps:$4 sm:$0xff]   ;;  %v3846_v14 = vld [vmem:[#allocation7 + $0xd4] ss:$8 sps:$4 sm:$0xff]  }
 0x17a   :  { %v1601_v17 = vpop.f32.mrf.mxu0 }
 0x17b   :  { %v1641_v19 = vadd.f32 %v1640_v61, %v1600_v16  ;;  %v1809_v21 = vmax.f32 %v1639_v15, 0.0  ;;  %v3844_v15 = vld [vmem:[#allocation7 + $0xd0] ss:$8 sps:$4 sm:$0xff]   ;;  %v3849_v16 = vld [vmem:[#allocation7 + $0xc4] ss:$8 sps:$4 sm:$0xff]  }
 0x17c   :  { %v1602_v24 = vpop.f32.mrf.mxu0  ;;  %v3847_v17 = vld [vmem:[#allocation7 + $0xc0] ss:$8 sps:$4 sm:$0xff]  }
 0x17d   :  { %v1810_v27 = vmax.f32 %v1641_v19, 0.0  ;;  %v1813_v29 = vpack.c.bf16 %v1809_v21, %v1809_v21  ;;  %v3852_v19 = vld [vmem:[#allocation7 + $0xb4] ss:$8 sps:$4 sm:$0xff]   ;;  %v3850_v21 = vld [vmem:[#allocation7 + $0xb0] ss:$8 sps:$4 sm:$0xff]  }
 0x17e   :  { %v3855_v24 = vld [vmem:[#allocation7 + $0xa4] ss:$8 sps:$4 sm:$0xff]  }
 0x17f   :  { %v1814_v28 = vpack.c.bf16 %v1810_v27, %v1810_v27  ;;  %v3853_v27 = vld [vmem:[#allocation7 + $0xa0] ss:$8 sps:$4 sm:$0xff]  }
 0x181   :  { %2245 = vmatprep.mubr.bf16.mxu0 %v1814_v28  ;;  %v3858_v28 = vld [vmem:[#allocation7 + $0x94] ss:$8 sps:$4 sm:$0xff]  }
 0x182   :  { %2246 = vmatmul.mubr.bf16.vlgmr.msra.gmra.mxu0 %v1813_v29  ;;  %v3856_v29 = vld [vmem:[#allocation7 + $0x90] ss:$8 sps:$4 sm:$0xff]  }
 0x183   :  { %2504 = vmatpush1.bf16.msra.mxu0 %v3814_v34  ;;  %v3868_v34 = vld [vmem:[#allocation8 + $0x60] sm:$0xff]  }
 0x184   :  { %2505 = vmatprep.subr.bf16.mxu0 %v3819_v36  ;;  %v3870_v36 = vld [vmem:[#allocation8 + $0x58] sm:$0xff]  }
 0x187   :  { %2506 = vmatpush1.bf16.msra.mxu0 %v3817_v52  ;;  %v3872_v52 = vld [vmem:[#allocation8 + $0x50] sm:$0xff]  }
 0x188   :  { %2507 = vmatprep.subr.bf16.mxu0 %v3822_v38  ;;  %v3873_v38 = vld [vmem:[#allocation8 + $0x10] sm:$0xff]  }
 0x18b   :  { %2508 = vmatpush1.bf16.msra.mxu0 %v3820_v41 }
 0x18c   :  { %2509 = vmatprep.subr.bf16.mxu0 %v3825_v42 }
 0x18f   :  { %2510 = vmatpush1.bf16.msra.mxu0 %v3823_v44 }
 0x190   :  { %2511 = vmatprep.subr.bf16.mxu0 %v3828_v45 }
 0x193   :  { %2512 = vmatpush1.bf16.msra.mxu0 %v3826_v55 }
 0x194   :  { %2513 = vmatprep.subr.bf16.mxu0 %v3831_v58 }
 0x197   :  { %v1679_v22 = vpop.f32.mrf.mxu1  ;;  %2514 = vmatpush1.bf16.msra.mxu0 %v3829_v0  ;;  %v4013_v0 = vmov 0.0  }
 0x198   :  { %v1680_v18 = vadd.f32 %v1679_v22, %v352_v40  ;;  %2515 = vmatprep.subr.bf16.mxu0 %v3834_v20  ;;  %v3861_v22 = vld [vmem:[#allocation7 + $0x84] ss:$8 sps:$4 sm:$0xff]  }
 0x199   :  { %v1681_v25 = vpop.f32.mrf.mxu1 }
 0x19a   :  { %v1682_v46 = vadd.f32 %v1681_v25, %v356_v43  ;;  %v3859_v25 = vld [vmem:[#allocation7 + $0x80] ss:$8 sps:$4 sm:$0xff]  }
 0x19b   :  { %v1683_v30 = vpop.f32.mrf.mxu1  ;;  %2516 = vmatpush1.bf16.msra.mxu0 %v3832_v5  ;;  %v1881_v43 = vld [vmem:[%s4238_s4] sm:$0x3] }
 0x19c   :  { %2517 = vmatprep.subr.bf16.mxu0 %v3837_v7  ;;  %v3862_v30 = vld [vmem:[#allocation8 + $0x78] sm:$0xff]   ;;  %v1890_v44 = vrot.slane %v1881_v43, %v4168_v4 }
 0x19d   :  { %v1684_v23 = vpop.f32.mrf.mxu1  ;;  %3300 = vmatprep.subr.bf16.mxu1 %v3862_v30 }
 0x19e   :  { %v3863_v23 = vld [vmem:[#allocation8 + $0x38] sm:$0xff]  }
 0x19f   :  { %2518 = vmatpush1.bf16.msra.mxu0 %v3835_v10 }
 0x1a0   :  { %2519 = vmatprep.subr.bf16.mxu0 %v3840_v11 }
 0x1a3   :  { %2520 = vmatpush2.bf16.msra.mxu0 %v3838_v39 }
 0x1a4   :  { %2521 = vmatprep.subr.bf16.mxu0 %v3843_v12  ;;  %v3878_v12 = vld [vmem:[%s4243_s9 + $0x38] sm:$0xff]  }
 0x1a7   :  { %2522 = vmatpush2.bf16.msra.mxu0 %v3841_v13 }
 0x1a8   :  { %2523 = vmatprep.subr.bf16.mxu0 %v3846_v14  ;;  %v3881_v14 = vld [vmem:[%s4243_s9 + $0x20] sm:$0xff]  }
 0x1ab   :  { %2524 = vmatpush2.bf16.msra.mxu0 %v3844_v15  ;;  %v3882_v15 = vld [vmem:[%s4243_s9 + $0x18] sm:$0xff]  }
 0x1ac   :  { %2525 = vmatprep.subr.bf16.mxu0 %v3849_v16  ;;  %v3883_v16 = vld [vmem:[%s4243_s9 + $0x10] sm:$0xff]  }
 0x1af   :  { %2526 = vmatpush2.bf16.msra.mxu0 %v3847_v17  ;;  %v3884_v17 = vld [vmem:[%s4243_s9 + $0x8] sm:$0xff]  }
 0x1b0   :  { %2527 = vmatprep.subr.bf16.mxu0 %v3852_v19  ;;  %v3885_v19 = vld [vmem:[%s4243_s9] sm:$0xff]  }
 0x1b3   :  { %2528 = vmatpush2.bf16.msra.mxu0 %v3850_v21  ;;  %v3886_v21 = vld [vmem:[%s4245_s11 + $0x18] sm:$0xff]  }
 0x1b4   :  { %2529 = vmatprep.subr.bf16.mxu0 %v3855_v24  ;;  %v3887_v24 = vld [vmem:[%s4245_s11 + $0x10] sm:$0xff]  }
 0x1b6   :  { %v1720_v31 = vpop.f32.mrf.mxu0 }
 0x1b7   :  { %v1721_v48 = vadd.f32 %v1720_v31, %v1680_v18  ;;  %2530 = vmatpush2.bf16.msra.mxu0 %v3853_v27  ;;  %v3864_v31 = vld [vmem:[#allocation8 + $0x70] sm:$0xff]   ;;  %v1886_v18 = vrot.slane %v1881_v43, %v4163_v3 }
 0x1b8   :  { %v1722_v32 = vpop.f32.mrf.mxu0  ;;  %2531 = vmatprep.subr.bf16.mxu0 %v3858_v28  ;;  %v3268_v28 = vld [vmem:[%s4242_s8] ss:$0 sm:$0xff] }
 0x1b9   :  { %v1723_v53 = vadd.f32 %v1722_v32, %v1682_v46  ;;  %v3865_v32 = vld [vmem:[#allocation8 + $0x30] sm:$0xff]  }
 0x1ba   :  { %v1724_v26 = vpop.f32.mrf.mxu0 }
 0x1bb   :  { %2532 = vmatpush2.bf16.msra.mxu0 %v3856_v29  ;;  %v3866_v26 = vld [vmem:[#allocation8 + $0x68] sm:$0xff]  }
 0x1bc   :  { %v1725_v33 = vpop.f32.mrf.mxu0  ;;  %2533 = vmatprep.subr.bf16.mxu0 %v3861_v22 }
 0x1bd   :  { %v3867_v33 = vld [vmem:[#allocation8 + $0x28] sm:$0xff]  }
 0x1bf   :  { %2534 = vmatpush2.bf16.msra.mxu0 %v3859_v25 }
 0x1c0   :  { %3356 = vmatprep.subr.bf16.mxu0 %v4013_v0 }
 0x1d6   :  { %v1802_v51 = vpop.f32.mrf.mxu0 }
 0x1d7   :  { %v1761_v50 = vpop.f32.mrf.mxu1 }
 0x1d8   :  { %v1762_v54 = vadd.f32 %v1761_v50, %v1721_v48  ;;  %v1804_v57 = vpop.f32.mrf.mxu0 }
 0x1d9   :  { %v1763_v56 = vpop.f32.mrf.mxu1 }
 0x1da   :  { %v1803_v59 = vadd.f32 %v1802_v51, %v1762_v54  ;;  %v1764_v60 = vadd.f32 %v1763_v56, %v1723_v53  ;;  %v1806_v62 = vpop.f32.mrf.mxu0 }
 0x1db   :  { %v1765_v61 = vpop.f32.mrf.mxu1  ;;  %v3876_v62 = vld [vmem:[#allocation8 + $0x40] sm:$0xff]  }
 0x1dc   :  { %v1805_v63 = vadd.f32 %v1804_v57, %v1764_v60  ;;  %v1811_v1 = vmax.f32 %v1803_v59, 0.0  ;;  %v1807_v2 = vpop.f32.mrf.mxu0  ;;  %v3874_v60 = vld [vmem:[#allocation8 + $0x48] sm:$0xff]  }
 0x1dd   :  { %v1766_v49 = vpop.f32.mrf.mxu1  ;;  %v3875_v61 = vld [vmem:[#allocation8 + $0x8] sm:$0xff]  }
 0x1de   :  { %v1812_v47 = vmax.f32 %v1805_v63, 0.0  ;;  %v1815_v6 = vpack.c.bf16 %v1811_v1, %v1811_v1  ;;  %v3877_v63 = vld [vmem:[#allocation8] sm:$0xff]  }
 0x1df   :  { %v2331_v1 = vld [vmem:[%s4240_s6] sm:$0x3] }
 0x1e0   :  { %v1816_v8 = vpack.c.bf16 %v1812_v47, %v1812_v47  ;;  %v2336_v49 = vrot.slane %v2331_v1, %v4163_v3  ;;  %v2340_v2 = vrot.slane %v2331_v1, %v4168_v4  ;;  %v3879_v3 = vld [vmem:[%s4243_s9 + $0x30] sm:$0xff]   ;;  %v3880_v4 = vld [vmem:[%s4243_s9 + $0x28] sm:$0xff]  }
 0x1e2   :  { %2286 = vmatprep.mubr.bf16.mxu1 %v1816_v8 }
 0x1e3   :  { %2287 = vmatmul.mubr.bf16.vlgmr.msra.gmra.mxu1 %v1815_v6 }
 0x1e4   :  { %3301 = vmatpush3.bf16.msra.mxu1 %v3863_v23 }
 0x1e5   :  { %3302 = vmatprep.subr.bf16.mxu1 %v3864_v31 }
 0x1e8   :  { %3303 = vmatpush3.bf16.msra.mxu1 %v3865_v32 }
 0x1e9   :  { %3304 = vmatprep.subr.bf16.mxu1 %v3866_v26  ;;  %v3888_v26 = vld [vmem:[%s4245_s11 + $0x8] sm:$0xff]  }
 0x1ec   :  { %3305 = vmatpush3.bf16.msra.mxu1 %v3867_v33  ;;  %v3889_v33 = vld [vmem:[%s4245_s11] sm:$0xff]  }
 0x1ed   :  { %3306 = vmatprep.subr.bf16.mxu1 %v3868_v34  ;;  %v3285_v34 = vld [vmem:[%s4244_s10] ss:$0 sm:$0xff]  ;;  %s4015_s10 = smov [#allocation10]  }
 0x1ee   :  { %s2937_s11 = sshll.u32 %s4015_s10, 4  ;;  %s2938_s11 = int_to_ptr.vmem [resolvable:$true] %s2937_s11 }
 0x1ef   :  { %p3979_p7 = scmp.lt.s32.totalorder %s2938_s11, %s2938_s11 }
 0x1f0   :  { %3307 = vmatpush3.bf16.msra.mxu1 %v3869_v35 }
 0x1f1   :  { %3308 = vmatprep.subr.bf16.mxu1 %v3870_v36 }
 0x1f4   :  { %3309 = vmatpush3.bf16.msra.mxu1 %v3871_v37 }
 0x1f5   :  { %3310 = vmatprep.subr.bf16.mxu1 %v3872_v52 }
 0x1f8   :  { %3311 = vmatpush3.bf16.msra.mxu1 %v3873_v38 }
 0x1f9   :  { %3312 = vmatprep.subr.bf16.mxu1 %v3874_v60 }
 0x1fc   :  { %3313 = vmatpush3.bf16.msra.mxu1 %v3875_v61 }
 0x1fd   :  { %3314 = vmatprep.subr.bf16.mxu1 %v3876_v62 }
 0x200   :  { %3315 = vmatpush3.bf16.msra.mxu1 %v3877_v63 }
 0x201   :  { %3336 = vmatprep.subr.bf16.mxu1 %v4013_v0 }
 0x242   :  { %v2247_v9 = vpop.f32.mrf.mxu0 }
 0x243   :  { %v2248_v45 = vadd.f32 %v2247_v9, %v1886_v18 }
 0x244   :  { %v2249_v40 = vpop.f32.mrf.mxu0 }
 0x245   :  { %v2250_v48 = vadd.f32 %v2249_v40, %v1890_v44 }
 0x246   :  { %v2251_v41 = vpop.f32.mrf.mxu0 }
 0x247   :  { %v3294_v41 = vld [vmem:[%s4246_s12] ss:$0 sm:$0xff]  ;;  %s3974_s12 = scalar_lea.vmem %s2938_s11, 128 }
 0x248   :  { %v2252_v42 = vpop.f32.mrf.mxu0  ;;  %p3975_p6 = scmp.ne.s32.totalorder %s2938_s11, %s3974_s12  ;;  %p3980_p8 = scmp.lt.s32.totalorder %s3974_s12, %s3974_s12 }
 0x24a   :  { %p3981_p9 = por %p3980_p8, %p3979_p7 }
 0x24c   :  { %p3982_p10 = pnand %p3981_p9, %p3975_p6 }
 0x2a3   :  { %v2288_v46 = vpop.f32.mrf.mxu1 }
 0x2a4   :  { %v2289_v50 = vadd.f32 %v2288_v46, %v2248_v45 }
 0x2a5   :  { %v2290_v51 = vpop.f32.mrf.mxu1 }
 0x2a6   :  { %v2291_v53 = vadd.f32 %v2290_v51, %v2250_v48  ;;  %v2295_v54 = vmax.f32 %v2289_v50, 0.0 }
 0x2a7   :  { %v2292_v55 = vpop.f32.mrf.mxu1 }
 0x2a8   :  { %v2296_v56 = vmax.f32 %v2291_v53, 0.0  ;;  %v2297_v59 = vpack.c.bf16 %v2295_v54, %v2295_v54 }
 0x2a9   :  { %v2293_v57 = vpop.f32.mrf.mxu1 }
 0x2aa   :  { %v2298_v58 = vpack.c.bf16 %v2296_v56, %v2296_v56 }
 0x2ac   :  { %2535 = vmatprep.mubr.bf16.mxu0 %v2298_v58 }
 0x2ad   :  { %2536 = vmatmul.mubr.bf16.vlgmr.msra.gmra.mxu0 %v2297_v59 }
 0x2ae   :  { %3364 = vmatprep.mubr.msk.bf16.mxu0 %vm4014_vm0, %v4013_v0  ;;  %3357 = vmatpush3.bf16.msra.mxu0 %v3886_v21 }
 0x2af   :  { %3358 = vmatprep.subr.bf16.mxu0 %v4013_v0 }
 0x2b2   :  { %3359 = vmatpush3.bf16.msra.mxu0 %v3887_v24 }
 0x2b3   :  { %3360 = vmatprep.subr.bf16.mxu0 %v4013_v0 }
 0x2b6   :  { %3361 = vmatpush3.bf16.msra.mxu0 %v3888_v26 }
 0x2b7   :  { %3362 = vmatprep.subr.bf16.mxu0 %v4013_v0 }
 0x2ba   :  { %3363 = vmatpush3.bf16.msra.mxu0 %v3889_v33 }
 0x36d   :  { %v2537_v20 = vpop.f32.mrf.mxu0 }
 0x36e   :  { %v2538_v47 = vadd.f32 %v2537_v20, %v2336_v49 }
 0x36f   :  { %v2539_v8 = vpop.f32.mrf.mxu0 }
 0x370   :  { %v2540_v5 = vadd.f32 %v2539_v8, %v2340_v2  ;;  %v2544_v6 = vmax.f32 %v2538_v47, 0.0 }
 0x371   :  { %v2541_v7 = vpop.f32.mrf.mxu0 }
 0x372   :  { %v2545_v10 = vmax.f32 %v2540_v5, 0.0  ;;  %v2546_v13 = vpack.c.bf16 %v2544_v6, %v2544_v6 }
 0x373   :  { %v2542_v11 = vpop.f32.mrf.mxu0 }
 0x374   :  { %v2547_v39 = vpack.c.bf16 %v2545_v10, %v2545_v10 }
 0x376   :  { %2715 = vmatprep.mubr.bf16.mxu1 %v2547_v39 }
 0x377   :  { %2716 = vmatmul.mubr.bf16.vlgmr.msra.gmra.mxu1 %v2546_v13 }
 0x378   :  { %3337 = vmatpush3.bf16.msra.mxu1 %v3878_v12  ;;  %3352 = vmatprep.mubr.msk.bf16.mxu1 %vm4014_vm0, %v4013_v0 }
 0x379   :  { %3338 = vmatprep.subr.bf16.mxu1 %v4013_v0 }
 0x37c   :  { %3339 = vmatpush3.bf16.msra.mxu1 %v3879_v3 }
 0x37d   :  { %3340 = vmatprep.subr.bf16.mxu1 %v4013_v0 }
 0x380   :  { %3341 = vmatpush3.bf16.msra.mxu1 %v3880_v4 }
 0x381   :  { %3342 = vmatprep.subr.bf16.mxu1 %v4013_v0 }
 0x384   :  { %3343 = vmatpush3.bf16.msra.mxu1 %v3881_v14 }
 0x385   :  { %3344 = vmatprep.subr.bf16.mxu1 %v4013_v0 }
 0x388   :  { %3345 = vmatpush3.bf16.msra.mxu1 %v3882_v15 }
 0x389   :  { %3346 = vmatprep.subr.bf16.mxu1 %v4013_v0 }
 0x38c   :  { %3347 = vmatpush3.bf16.msra.mxu1 %v3883_v16 }
 0x38d   :  { %3348 = vmatprep.subr.bf16.mxu1 %v4013_v0 }
 0x390   :  { %3349 = vmatpush3.bf16.msra.mxu1 %v3884_v17 }
 0x391   :  { %3350 = vmatprep.subr.bf16.mxu1 %v4013_v0 }
 0x394   :  { %3351 = vmatpush3.bf16.msra.mxu1 %v3885_v19 }
 0x437   :  { %v3316_v27 = vpop.f32.mrf.mxu1 }
 0x439   :  { %v3317_v29 = vpop.f32.mrf.mxu1 }
 0x43a   :  { %v3318_v22 = vadd.f32 %v3317_v29, %v3316_v27 }
 0x43b   :  { %v3319_v25 = vpop.f32.mrf.mxu1 }
 0x43c   :  { %v2718_v30 = vadd.f32 %v3318_v22, %v3268_v28 }
 0x43d   :  { %v3320_v23 = vpop.f32.mrf.mxu1 }
 0x43e   :  { %v2723_v31 = vmax.f32 %v2718_v30, 0.0 }
 0x440   :  { %v2724_v32 = vpack.c.bf16 %v2723_v31, %v2723_v31 }
 0x442   :  { %3353 = vmatmul.mubr.bf16.vlgmr.msra.gmra.mxu1 %v2724_v32 }
 0x502   :  { %v2830_v35 = vpop.f32.mrf.mxu1 }
 0x503   :  { %v2831_v36 = vadd.f32 %v3285_v34, %v2830_v35 }
 0x504   :  { %v3354_v37 = vpop.f32.mrf.mxu1 }
 0x505   :  { %v2836_v52 = vmax.f32 %v2831_v36, 0.0 }
 0x506   :  { %v2833_v38 = vpop.f32.mrf.mxu1 }
 0x507   :  { %v2837_v9 = vpack.c.bf16 %v2836_v52, %v2836_v52 }
 0x508   :  { %v3355_v40 = vpop.f32.mrf.mxu1 }
 0x509   :  { %3365 = vmatmul.mubr.msk.bf16.vlgmr.msra.gmra.mxu0 %vm2877_vm1, %v2837_v9 }
 0x5c9   :  { %v2915_v42 = vpop.f32.mrf.mxu0 }
 0x5ca   :  { %v2916_v43 = vadd.f32 %v3294_v41, %v2915_v42 }
 0x5cb   :  { %v3366_v18 = vpop.f32.mrf.mxu0 }
 0x5cc   :  { %2921 = vmax.xlane.f32.xlu0 %v2916_v43 }
 0x5cd   :  { %v2918_v44 = vpop.f32.mrf.mxu0 }
 0x5cf   :  { %v3367_v45 = vpop.f32.mrf.mxu0 }
 0x655   :  { %v2922_v46 = vpop.xlane.xlu0 %2921 }
 0x656   :  { %v2923_v48 = vsub.f32 %v2916_v43, %v2922_v46 }
 0x658   :  { %v2924_v50 = vmul.f32 1.442695, %v2923_v48 }
 0x65a   :  { %3890 = vpow2.f32 %v2924_v50 }
 0x667   :  { %v3891_v51 = vpop.eup %3890 }
 0x668   :  { %2926 = vadd.xlane.f32.xlu0 %v3891_v51 }
 0x6f1   :  { %v2927_v53 = vpop.xlane.xlu0 %2926 }
 0x6f2   :  { %3892 = vrcp.f32 %v2927_v53 }
 0x6ff   :  { %v3893_v54 = vpop.eup %3892 }
 0x700   :  { %v2929_v55 = vmul.f32 %v3893_v54, %v3891_v51 }
 0x702   :  { %2930 = vst [vmem:[#allocation10] sm:$0xff] %v2929_v55 }
 0x703   :  { %3985 = shalt.err (!%p3982_p10)
}
 0x704   :  { %2940 = dma.vmem_to_hbm [thread:$0]  %s2938_s11, 128, %s4247_s13, [#allocation4]  }
 0x705   :  { %4000 = dma.done.wait [#allocation4], 128  }
 0x706   :  { %4001 = vsyncadd [#allocation4], 4294967168 }
 0x707   :  { %2944 = vsyncpa [#allocation3], 1 }
 0x708   :  { %2945 = vsyncpa [#allocation6], 1 }
 0x709   :  { %2946 = vsyncpa [#allocation9], 1 }
 0x70a   :  { %2947 = vsyncpa [#allocation4], 1 }

</bundles_post_ra>
